<compile_context>
chip_gen: v7x
topology: tpu7x:2x2x1
jax: 0.10.0
libtpu: 0.0.40
codegen_flags: <defaults>
</compile_context>

<pallas_src>
import numpy as np
import jax
import jax.numpy as jnp
from jax import lax
from jax.experimental import pallas as pl
from jax.experimental.pallas import tpu as pltpu


def adaptive_avg_pool_matrix(l_in, l_out):
    """(l_in, l_out) averaging matrix reproducing nn.AdaptiveAvgPool1d bins."""
    m = np.zeros((l_in, l_out), np.float32)
    for i in range(l_out):
        start = (i * l_in) // l_out
        end = -((-(i + 1) * l_in) // l_out)          # ceil((i+1)*l_in/l_out)
        m[start:end, i] = 1.0 / (end - start)
    return m


def prepare_params(params, pool_out=10):
    """One-time host-side re-layout of the PyTorch-style parameters."""
    emb, w_conv, b_conv = params["emb"], params["w_conv"], params["b_conv"]
    w_fc, b_fc = params["w_fc"], params["b_fc"]
    c_out, c_in, k_size = w_conv.shape               # (hidden, max_len, K)
    _, hidden = emb.shape
    l_out = hidden - k_size + 1
    n_cat = w_fc.shape[0]
    assert w_fc.shape[1] == c_out * pool_out

    # Stacked shifted pool matrices: qt[k*P + p, j] = P_mat[j - k, p], so that
    # sum_j qt[kP+p, j] * e[b, c, j] = (conv tap k, pooled bin p) contribution.
    p_mat = adaptive_avg_pool_matrix(l_out, pool_out)           # (l_out, P)
    qt = np.zeros((k_size * pool_out, hidden), np.float32)
    for k in range(k_size):
        qt[k * pool_out:(k + 1) * pool_out, k:k + l_out] = p_mat.T

    return {
        "emb":    jnp.asarray(emb, jnp.bfloat16),               # (n_vocab, hidden)
        "qt":     jnp.asarray(qt),                              # (K*P, hidden) f32
        "w_taps": jnp.transpose(jnp.asarray(w_conv, jnp.bfloat16), (2, 1, 0)),  # (K, c_in, c_out)
        "b_conv": jnp.asarray(b_conv, jnp.float32).reshape(1, c_out),
        "wfc_pn": jnp.transpose(
            jnp.asarray(w_fc, jnp.float32).reshape(n_cat, c_out, pool_out),
            (0, 2, 1)),                                         # (n_cat, P, c_out)
        "b_fc":   jnp.asarray(b_fc, jnp.float32).reshape(1, n_cat),
        "pool_out": pool_out,
    }


def _imdb_cnn_kernel(e_ref, qt_ref, w_ref, bc_ref, wfc_ref, bfc_ref, out_ref):
    """Fused Conv1d + AdaptiveAvgPool1d + Linear + LogSoftmax for one batch tile.

    e_ref   : (B_t, L_in, c_in)  bf16  embedded tokens, length-major (c_in on lanes)
    qt_ref  : (K*P, L_in)        f32   stacked shifted adaptive-pool matrices
    w_ref   : (K, c_in, c_out)   bf16  conv weight per tap
    bc_ref  : (1, c_out)         f32   conv bias
    wfc_ref : (n_cat, P, c_out)  f32   fc weight re-ordered to (n, p, o)
    bfc_ref : (1, n_cat)         f32   fc bias
    out_ref : (B_t, n_cat)       f32   log-probabilities
    """
    b_t, l_in, c_in = e_ref.shape
    kp, _ = qt_ref.shape
    k_size, _, c_out = w_ref.shape
    p_out = kp // k_size
    n_cat = out_ref.shape[-1]

    e_t = e_ref[...].astype(jnp.float32)                         # (B_t, L_in, c_in)
    qt_b = jnp.broadcast_to(qt_ref[...], (b_t, kp, l_in))        # hoisted once

    # Conv tap-shifts + AdaptiveAvgPool1d folded into one batched matmul:
    #   a[b, k*P + p, c] = sum_j Q_k[j, p] * e[b, c, j]
    a = jnp.einsum("bqj,bjc->bqc", qt_b, e_t,
                   preferred_element_type=jnp.float32)           # (B_t, K*P, c_in)

    # Contract over input channels (c_in = max_len) per tap; sum the K taps.
    # Each dot is (B_t*P, c_in) @ (c_in, c_out) -> lane-dense (c_out last).
    def tap(k):
        a_k = a[:, k * p_out:(k + 1) * p_out, :].reshape(b_t * p_out, c_in)
        return jnp.dot(a_k, w_ref[k].astype(jnp.float32),
                       preferred_element_type=jnp.float32)
    pooled = tap(0)
    for k in range(1, k_size):                                   # static, small K
        pooled = pooled + tap(k)
    pooled = pooled + bc_ref[...]                                # (1, c_out) broadcast
    pooled3 = pooled.reshape(b_t, p_out, c_out)                  # (B_t, P, c_out)

    # Linear(hidden*10 -> n_cat) epilogue (tiny): VPU multiply + reduce per class.
    # TODO(synk): F.dropout(p=0.2) is stochastic; applied as identity
    # (inference/eval semantics) since RNG streams cannot match PyTorch.
    cols = []
    for n in range(n_cat):                                       # static, n_cat small
        t = pooled3 * wfc_ref[n]                                 # (B_t, P, c_out)
        cols.append(jnp.sum(jnp.sum(t, axis=2), axis=1, keepdims=True))
    logits = jnp.concatenate(cols, axis=1) + bfc_ref[...]        # (B_t, n_cat)

    m = jnp.max(logits, axis=-1, keepdims=True)
    lse = m + jnp.log(jnp.sum(jnp.exp(logits - m), axis=-1, keepdims=True))
    out_ref[...] = logits - lse


def imdb_cnn_forward(tokens, prep):
    emb, qt = prep["emb"], prep["qt"]
    w_taps, b_conv = prep["w_taps"], prep["b_conv"]
    wfc_pn, b_fc = prep["wfc_pn"], prep["b_fc"]

    bs, max_len = tokens.shape
    _, hidden = emb.shape
    k_size, c_in, c_out = w_taps.shape
    kp = qt.shape[0]
    n_cat, p_out, _ = wfc_pn.shape
    assert c_in == max_len, "Conv1d in-channels must equal max_len (PyTorch layout)"

    # Embedding as a real gather in XLA (reviewer option (b)); transpose to the
    # length-major layout so c_in sits on the lane axis inside the kernel.
    # NOTE: out-of-range ids clamp (nn.Embedding would raise).
    e = jnp.take(emb, tokens.astype(jnp.int32), axis=0)          # (bs, c_in, hidden)
    e_t = jnp.transpose(e, (0, 2, 1))                            # (bs, hidden, c_in)

    block_b = 8 if bs % 8 == 0 else bs                           # batch rows per step
    grid = (bs // block_b,)

    return pl.pallas_call(
        _imdb_cnn_kernel,
        out_shape=jax.ShapeDtypeStruct((bs, n_cat), jnp.float32),
        grid=grid,
        in_specs=[
            pl.BlockSpec((block_b, hidden, c_in), lambda i: (i, 0, 0)),
            pl.BlockSpec((kp, hidden),            lambda i: (0, 0)),
            pl.BlockSpec((k_size, c_in, c_out),   lambda i: (0, 0, 0)),
            pl.BlockSpec((1, c_out),              lambda i: (0, 0)),
            pl.BlockSpec((n_cat, p_out, c_out),   lambda i: (0, 0, 0)),
            pl.BlockSpec((1, n_cat),              lambda i: (0, 0)),
        ],
        out_specs=pl.BlockSpec((block_b, n_cat), lambda i: (i, 0)),
        compiler_params=pltpu.CompilerParams(dimension_semantics=("parallel",)),
    )(e_t, qt, w_taps, b_conv, wfc_pn, b_fc)


def reference_forward(tokens, params, pool_out=10):
    """Pure-JAX reference mirroring the PyTorch forward (dropout in eval mode)."""
    emb = jnp.asarray(params["emb"], jnp.float32)
    w_conv = jnp.asarray(params["w_conv"], jnp.float32)
    b_conv = jnp.asarray(params["b_conv"], jnp.float32)
    w_fc = jnp.asarray(params["w_fc"], jnp.float32)
    b_fc = jnp.asarray(params["b_fc"], jnp.float32)

    e = emb[tokens]                                              # (bs, max_len, hidden)
    conv = lax.conv_general_dilated(
        e, w_conv, window_strides=(1,), padding="VALID",
        dimension_numbers=("NCH", "OIH", "NCH")) + b_conv[None, :, None]
    l_out = conv.shape[-1]
    bins = []
    for p in range(pool_out):                                    # AdaptiveAvgPool1d bins
        s = (p * l_out) // pool_out
        t = -((-(p + 1) * l_out) // pool_out)
        bins.append(conv[..., s:t].mean(axis=-1))
    pooled = jnp.stack(bins, axis=-1)                            # (bs, c_out, P)
    flat = pooled.reshape(tokens.shape[0], -1)
    logits = flat @ w_fc.T + b_fc
    return jax.nn.log_softmax(logits, axis=-1)


if __name__ == "__main__":
    # Small shapes consistent with the module: Conv1d(max_len, hidden, k),
    # AdaptiveAvgPool1d(10), Linear(hidden*10, n_cat).
    bs, n_vocab, hidden, max_len, k_size, n_cat = 16, 50, 32, 16, 3, 4

    key = jax.random.PRNGKey(0)
    k_tok, k_emb, k_wc, k_bc, k_wf, k_bf = jax.random.split(key, 6)
    tokens = jax.random.randint(k_tok, (bs, max_len), 0, n_vocab, dtype=jnp.int32)
    params = {
        # bf16 storage for the large tensors (perf review rec); f32 accumulation.
        "emb":    (0.1 * jax.random.normal(k_emb, (n_vocab, hidden))).astype(jnp.bfloat16),
        "w_conv": (0.1 * jax.random.normal(k_wc, (hidden, max_len, k_size))).astype(jnp.bfloat16),
        "b_conv": 0.1 * jax.random.normal(k_bc, (hidden,), jnp.float32),
        "w_fc":   0.1 * jax.random.normal(k_wf, (n_cat, hidden * 10), jnp.float32),
        "b_fc":   0.1 * jax.random.normal(k_bf, (n_cat,), jnp.float32),
    }

    prep = prepare_params(params)
    out = jax.block_until_ready(imdb_cnn_forward(tokens, prep))
    ref = reference_forward(tokens, params)

    assert out.shape == (bs, n_cat)
    assert jnp.allclose(out, ref, rtol=1e-3, atol=1e-3), (out, ref)
    print("KERNEL_OK")
</pallas_src>

<mosaic_0001>
module attributes {stable_mosaic.version = 11 : i64} {
  func.func @_imdb_cnn_kernel(%arg0: i32, %arg1: memref<8x32x16xbf16, #tpu.memory_space<vmem>>, %arg2: memref<30x32xf32, #tpu.memory_space<vmem>>, %arg3: memref<3x16x32xbf16, #tpu.memory_space<vmem>>, %arg4: memref<1x32xf32, #tpu.memory_space<vmem>>, %arg5: memref<4x10x32xf32, #tpu.memory_space<vmem>>, %arg6: memref<1x4xf32, #tpu.memory_space<vmem>>, %arg7: memref<8x4xf32, #tpu.memory_space<vmem>>) attributes {dimension_semantics = [#tpu.dimension_semantics<parallel>], iteration_bounds = array<i64: 2>, scalar_prefetch = 0 : i64, scratch_operands = 0 : i64, tpu.core_type = #tpu.core_type<tc>, window_params = [{transform_indices = @transform_0, window_bounds = array<i64: 8, 32, 16>}, {pipeline_mode = #tpu.pipeline_mode<synchronous>, transform_indices = @transform_1, window_bounds = array<i64: 30, 32>}, {pipeline_mode = #tpu.pipeline_mode<synchronous>, transform_indices = @transform_2, window_bounds = array<i64: 3, 16, 32>}, {pipeline_mode = #tpu.pipeline_mode<synchronous>, transform_indices = @transform_3, window_bounds = array<i64: 1, 32>}, {pipeline_mode = #tpu.pipeline_mode<synchronous>, transform_indices = @transform_4, window_bounds = array<i64: 4, 10, 32>}, {pipeline_mode = #tpu.pipeline_mode<synchronous>, transform_indices = @transform_5, window_bounds = array<i64: 1, 4>}, {transform_indices = @transform_6, window_bounds = array<i64: 8, 4>}]} {
    %c0 = arith.constant 0 : index
    %c0_0 = arith.constant 0 : index
    %c0_1 = arith.constant 0 : index
    %0 = vector.load %arg1[%c0, %c0_0, %c0_1] : memref<8x32x16xbf16, #tpu.memory_space<vmem>>, vector<8x32x16xbf16>
    %1 = arith.extf %0 : vector<8x32x16xbf16> to vector<8x32x16xf32>
    %c0_2 = arith.constant 0 : index
    %c0_3 = arith.constant 0 : index
    %2 = vector.load %arg2[%c0_2, %c0_3] : memref<30x32xf32, #tpu.memory_space<vmem>>, vector<30x32xf32>
    %3 = vector.shape_cast %2 : vector<30x32xf32> to vector<1x30x32xf32>
    %4 = vector.broadcast %3 : vector<1x30x32xf32> to vector<8x30x32xf32>
    "tpu.trace_start"() <{level = 10 : i32, message = "bqj,bjc->bqc"}> : () -> ()
    %cst = arith.constant dense<0.000000e+00> : vector<8x30x16xf32>
    %5 = tpu.matmul %4, %1, %cst {dimension_numbers = #tpu.dot_dimension_numbers<[2], [1], [1], [2], [0, 0, 0, 1, 1, 2], [0], [0]>} : vector<8x30x32xf32>, vector<8x32x16xf32>, vector<8x30x16xf32> -> vector<8x30x16xf32>
    "tpu.trace_stop"() : () -> ()
    %6 = vector.extract_strided_slice %5 {offsets = [0, 0, 0], sizes = [8, 10, 16], strides = [1, 1, 1]} : vector<8x30x16xf32> to vector<8x10x16xf32>
    %7 = vector.shape_cast %6 : vector<8x10x16xf32> to vector<80x16xf32>
    %c0_4 = arith.constant 0 : index
    %c0_5 = arith.constant 0 : index
    %c0_6 = arith.constant 0 : index
    %8 = vector.load %arg3[%c0_4, %c0_5, %c0_6] : memref<3x16x32xbf16, #tpu.memory_space<vmem>>, vector<1x16x32xbf16>
    %9 = vector.shape_cast %8 : vector<1x16x32xbf16> to vector<16x32xbf16>
    %10 = arith.extf %9 : vector<16x32xbf16> to vector<16x32xf32>
    %cst_7 = arith.constant dense<0.000000e+00> : vector<80x32xf32>
    %11 = tpu.matmul %7, %10, %cst_7 {dimension_numbers = #tpu.dot_dimension_numbers<[1], [0], [0], [1], [0, 0, 1, 1], [], []>} : vector<80x16xf32>, vector<16x32xf32>, vector<80x32xf32> -> vector<80x32xf32>
    %12 = vector.extract_strided_slice %5 {offsets = [0, 10, 0], sizes = [8, 10, 16], strides = [1, 1, 1]} : vector<8x30x16xf32> to vector<8x10x16xf32>
    %13 = vector.shape_cast %12 : vector<8x10x16xf32> to vector<80x16xf32>
    %c1 = arith.constant 1 : index
    %c0_8 = arith.constant 0 : index
    %c0_9 = arith.constant 0 : index
    %14 = vector.load %arg3[%c1, %c0_8, %c0_9] : memref<3x16x32xbf16, #tpu.memory_space<vmem>>, vector<1x16x32xbf16>
    %15 = vector.shape_cast %14 : vector<1x16x32xbf16> to vector<16x32xbf16>
    %16 = arith.extf %15 : vector<16x32xbf16> to vector<16x32xf32>
    %cst_10 = arith.constant dense<0.000000e+00> : vector<80x32xf32>
    %17 = tpu.matmul %13, %16, %cst_10 {dimension_numbers = #tpu.dot_dimension_numbers<[1], [0], [0], [1], [0, 0, 1, 1], [], []>} : vector<80x16xf32>, vector<16x32xf32>, vector<80x32xf32> -> vector<80x32xf32>
    %18 = arith.addf %11, %17 : vector<80x32xf32>
    %19 = vector.extract_strided_slice %5 {offsets = [0, 20, 0], sizes = [8, 10, 16], strides = [1, 1, 1]} : vector<8x30x16xf32> to vector<8x10x16xf32>
    %20 = vector.shape_cast %19 : vector<8x10x16xf32> to vector<80x16xf32>
    %c2 = arith.constant 2 : index
    %c0_11 = arith.constant 0 : index
    %c0_12 = arith.constant 0 : index
    %21 = vector.load %arg3[%c2, %c0_11, %c0_12] : memref<3x16x32xbf16, #tpu.memory_space<vmem>>, vector<1x16x32xbf16>
    %22 = vector.shape_cast %21 : vector<1x16x32xbf16> to vector<16x32xbf16>
    %23 = arith.extf %22 : vector<16x32xbf16> to vector<16x32xf32>
    %cst_13 = arith.constant dense<0.000000e+00> : vector<80x32xf32>
    %24 = tpu.matmul %20, %23, %cst_13 {dimension_numbers = #tpu.dot_dimension_numbers<[1], [0], [0], [1], [0, 0, 1, 1], [], []>} : vector<80x16xf32>, vector<16x32xf32>, vector<80x32xf32> -> vector<80x32xf32>
    %25 = arith.addf %18, %24 : vector<80x32xf32>
    %c0_14 = arith.constant 0 : index
    %c0_15 = arith.constant 0 : index
    %26 = vector.load %arg4[%c0_14, %c0_15] : memref<1x32xf32, #tpu.memory_space<vmem>>, vector<1x32xf32>
    %27 = vector.broadcast %26 : vector<1x32xf32> to vector<80x32xf32>
    %28 = arith.addf %25, %27 : vector<80x32xf32>
    %29 = vector.shape_cast %28 : vector<80x32xf32> to vector<8x10x32xf32>
    %c0_16 = arith.constant 0 : index
    %c0_17 = arith.constant 0 : index
    %c0_18 = arith.constant 0 : index
    %30 = vector.load %arg5[%c0_16, %c0_17, %c0_18] : memref<4x10x32xf32, #tpu.memory_space<vmem>>, vector<1x10x32xf32>
    %31 = vector.shape_cast %30 : vector<1x10x32xf32> to vector<10x32xf32>
    %32 = vector.shape_cast %31 : vector<10x32xf32> to vector<1x10x32xf32>
    %33 = vector.broadcast %32 : vector<1x10x32xf32> to vector<8x10x32xf32>
    %34 = arith.mulf %29, %33 : vector<8x10x32xf32>
    %cst_19 = arith.constant dense<0.000000e+00> : vector<8x10xf32>
    %35 = vector.multi_reduction <add>, %34, %cst_19 [2] : vector<8x10x32xf32> to vector<8x10xf32>
    %cst_20 = arith.constant dense<0.000000e+00> : vector<8xf32>
    %36 = vector.multi_reduction <add>, %35, %cst_20 [1] : vector<8x10xf32> to vector<8xf32>
    %37 = vector.shape_cast %36 : vector<8xf32> to vector<8x1xf32>
    %c1_21 = arith.constant 1 : index
    %c0_22 = arith.constant 0 : index
    %c0_23 = arith.constant 0 : index
    %38 = vector.load %arg5[%c1_21, %c0_22, %c0_23] : memref<4x10x32xf32, #tpu.memory_space<vmem>>, vector<1x10x32xf32>
    %39 = vector.shape_cast %38 : vector<1x10x32xf32> to vector<10x32xf32>
    %40 = vector.shape_cast %39 : vector<10x32xf32> to vector<1x10x32xf32>
    %41 = vector.broadcast %40 : vector<1x10x32xf32> to vector<8x10x32xf32>
    %42 = arith.mulf %29, %41 : vector<8x10x32xf32>
    %cst_24 = arith.constant dense<0.000000e+00> : vector<8x10xf32>
    %43 = vector.multi_reduction <add>, %42, %cst_24 [2] : vector<8x10x32xf32> to vector<8x10xf32>
    %cst_25 = arith.constant dense<0.000000e+00> : vector<8xf32>
    %44 = vector.multi_reduction <add>, %43, %cst_25 [1] : vector<8x10xf32> to vector<8xf32>
    %45 = vector.shape_cast %44 : vector<8xf32> to vector<8x1xf32>
    %c2_26 = arith.constant 2 : index
    %c0_27 = arith.constant 0 : index
    %c0_28 = arith.constant 0 : index
    %46 = vector.load %arg5[%c2_26, %c0_27, %c0_28] : memref<4x10x32xf32, #tpu.memory_space<vmem>>, vector<1x10x32xf32>
    %47 = vector.shape_cast %46 : vector<1x10x32xf32> to vector<10x32xf32>
    %48 = vector.shape_cast %47 : vector<10x32xf32> to vector<1x10x32xf32>
    %49 = vector.broadcast %48 : vector<1x10x32xf32> to vector<8x10x32xf32>
    %50 = arith.mulf %29, %49 : vector<8x10x32xf32>
    %cst_29 = arith.constant dense<0.000000e+00> : vector<8x10xf32>
    %51 = vector.multi_reduction <add>, %50, %cst_29 [2] : vector<8x10x32xf32> to vector<8x10xf32>
    %cst_30 = arith.constant dense<0.000000e+00> : vector<8xf32>
    %52 = vector.multi_reduction <add>, %51, %cst_30 [1] : vector<8x10xf32> to vector<8xf32>
    %53 = vector.shape_cast %52 : vector<8xf32> to vector<8x1xf32>
    %c3 = arith.constant 3 : index
    %c0_31 = arith.constant 0 : index
    %c0_32 = arith.constant 0 : index
    %54 = vector.load %arg5[%c3, %c0_31, %c0_32] : memref<4x10x32xf32, #tpu.memory_space<vmem>>, vector<1x10x32xf32>
    %55 = vector.shape_cast %54 : vector<1x10x32xf32> to vector<10x32xf32>
    %56 = vector.shape_cast %55 : vector<10x32xf32> to vector<1x10x32xf32>
    %57 = vector.broadcast %56 : vector<1x10x32xf32> to vector<8x10x32xf32>
    %58 = arith.mulf %29, %57 : vector<8x10x32xf32>
    %cst_33 = arith.constant dense<0.000000e+00> : vector<8x10xf32>
    %59 = vector.multi_reduction <add>, %58, %cst_33 [2] : vector<8x10x32xf32> to vector<8x10xf32>
    %cst_34 = arith.constant dense<0.000000e+00> : vector<8xf32>
    %60 = vector.multi_reduction <add>, %59, %cst_34 [1] : vector<8x10xf32> to vector<8xf32>
    %61 = vector.shape_cast %60 : vector<8xf32> to vector<8x1xf32>
    %62 = tpu.concatenate %37, %45, %53, %61 in 1 : vector<8x1xf32>, vector<8x1xf32>, vector<8x1xf32>, vector<8x1xf32> -> vector<8x4xf32>
    %c0_35 = arith.constant 0 : index
    %c0_36 = arith.constant 0 : index
    %63 = vector.load %arg6[%c0_35, %c0_36] : memref<1x4xf32, #tpu.memory_space<vmem>>, vector<1x4xf32>
    %64 = vector.broadcast %63 : vector<1x4xf32> to vector<8x4xf32>
    %65 = arith.addf %62, %64 : vector<8x4xf32>
    %cst_37 = arith.constant dense<0xFF800000> : vector<8xf32>
    %66 = vector.multi_reduction <maximumf>, %65, %cst_37 [1] : vector<8x4xf32> to vector<8xf32>
    %67 = vector.shape_cast %66 : vector<8xf32> to vector<8x1xf32>
    %68 = vector.broadcast %67 : vector<8x1xf32> to vector<8x4xf32>
    %69 = arith.subf %65, %68 : vector<8x4xf32>
    %70 = math.exp %69 : vector<8x4xf32>
    %cst_38 = arith.constant dense<0.000000e+00> : vector<8xf32>
    %71 = vector.multi_reduction <add>, %70, %cst_38 [1] : vector<8x4xf32> to vector<8xf32>
    %72 = vector.shape_cast %71 : vector<8xf32> to vector<8x1xf32>
    %73 = math.log %72 : vector<8x1xf32>
    %74 = arith.addf %67, %73 : vector<8x1xf32>
    %75 = vector.broadcast %74 : vector<8x1xf32> to vector<8x4xf32>
    %76 = arith.subf %65, %75 : vector<8x4xf32>
    %c0_39 = arith.constant 0 : index
    %c0_40 = arith.constant 0 : index
    %77 = vector.load %arg7[%c0_39, %c0_40] : memref<8x4xf32, #tpu.memory_space<vmem>>, vector<8x4xf32>
    tpu.vector_store %arg7[%c0_39, %c0_40], %76 {strides = array<i32>} : memref<8x4xf32, #tpu.memory_space<vmem>>, vector<8x4xf32>,
    return
  }
  func.func @transform_0(%arg0: i32) -> (i32, i32, i32) {
    %c0_i32 = arith.constant 0 : i32
    %c0_i32_0 = arith.constant 0 : i32
    %c0_i32_1 = arith.constant 0 : i32
    return %arg0, %c0_i32, %c0_i32_0 : i32, i32, i32
  }
  func.func @transform_1(%arg0: i32) -> (i32, i32) {
    %c0_i32 = arith.constant 0 : i32
    %c0_i32_0 = arith.constant 0 : i32
    %c0_i32_1 = arith.constant 0 : i32
    return %c0_i32, %c0_i32_0 : i32, i32
  }
  func.func @transform_2(%arg0: i32) -> (i32, i32, i32) {
    %c0_i32 = arith.constant 0 : i32
    %c0_i32_0 = arith.constant 0 : i32
    %c0_i32_1 = arith.constant 0 : i32
    %c0_i32_2 = arith.constant 0 : i32
    return %c0_i32, %c0_i32_0, %c0_i32_1 : i32, i32, i32
  }
  func.func @transform_3(%arg0: i32) -> (i32, i32) {
    %c0_i32 = arith.constant 0 : i32
    %c0_i32_0 = arith.constant 0 : i32
    %c0_i32_1 = arith.constant 0 : i32
    return %c0_i32, %c0_i32_0 : i32, i32
  }
  func.func @transform_4(%arg0: i32) -> (i32, i32, i32) {
    %c0_i32 = arith.constant 0 : i32
    %c0_i32_0 = arith.constant 0 : i32
    %c0_i32_1 = arith.constant 0 : i32
    %c0_i32_2 = arith.constant 0 : i32
    return %c0_i32, %c0_i32_0, %c0_i32_1 : i32, i32, i32
  }
  func.func @transform_5(%arg0: i32) -> (i32, i32) {
    %c0_i32 = arith.constant 0 : i32
    %c0_i32_0 = arith.constant 0 : i32
    %c0_i32_1 = arith.constant 0 : i32
    return %c0_i32, %c0_i32_0 : i32, i32
  }
  func.func @transform_6(%arg0: i32) -> (i32, i32) {
    %c0_i32 = arith.constant 0 : i32
    %c0_i32_0 = arith.constant 0 : i32
    return %arg0, %c0_i32 : i32, i32
  }
}

</mosaic_0001>

<bundles_post_ra>
// kernel: tpu_custom_call.1
= control target key start
LH: loop header
LB: loop body
LE: loop exit
PB: predicated region body
PF: predicated region fallthrough
CT: control target
= control target key end

     0   :  { %s5347_s21 = smov 0   ;;  %s6918_s0 = inlined_call_operand.vmem [shape: bf16[16,32,16], index: 0, kind: input, shape index: {}]   ;;  %s6919_s1 = inlined_call_operand.vmem [shape: f32[30,32], index: 1, kind: input, shape index: {}]   ;;  %s6920_s2 = inlined_call_operand.vmem [shape: bf16[3,16,32], index: 2, kind: input, shape index: {}]   ;;  %s6921_s3 = inlined_call_operand.vmem [shape: f32[1,32], index: 3, kind: input, shape index: {}]   ;;  %s6922_s4 = inlined_call_operand.vmem [shape: f32[4,10,32], index: 4, kind: input, shape index: {}]   ;;  %s6923_s5 = inlined_call_operand.vmem [shape: f32[1,4], index: 5, kind: input, shape index: {}]   ;;  %s6924_s6 = inlined_call_operand.vmem [shape: f32[16,4], index: 6, kind: output, shape index: {}]  }
   0x1 LB: > { %s5353_s22 = sadd.s32 4294967295, %s5309_s21   ;;  %p4735_p0 = scmp.ge.s32.totalorder %s5309_s21, 1  ;;  %s5309_s21 = sphi %s5347_s21, %s16_s21  }
   0x2   : > { %p214_p1 = scmp.lt.s32.totalorder %s5309_s21, 3 }
   0x4   : > { %p215_p2 = pnand %p4735_p0, %p214_p1 }
   0x5   : > { %s4736_s23 = sshll.u32 (!%p215_p2), %s5353_s22, 3  ;;  %v5361_v0 = vld [vmem:[%s6919_s1] sm:$0xff] (!%p215_p2)  ;;  %vm323_vm0 = vcmask (!%p215_p2), 261120   ;;  %v5381_v7 = vld [vmem:[%s6919_s1 + $0x8] sm:$0xff] (!%p215_p2)  ;;  %v5386_v8 = vld [vmem:[%s6919_s1 + $0x10] sm:$0xff] (!%p215_p2)  ;;  %v6925_v25 = vlaneseq (!%p215_p2)  ;;  %vm1555_vm1 = vcmask (!%p215_p2), 130048  }
   0x6   : > { %218 = sbr.rel (%p215_p2) target bundleno = 1281 (0x501), region = 44  ;;  %p245_p3 = scmp.lt.s32.totalorder (!%p215_p2), %s4736_s23, 15  ;;  %5026 = vmatprep.mubr.msk.f32.mxu1 (!%p215_p2), %vm323_vm0, %v5361_v0  ;;  %5054 = vmatprep.mubr.msk.f32.mxu0 (!%p215_p2), %vm323_vm0, %v5361_v0  ;;  %v322_v11 = vld [vmem:[%s6919_s1 + $0x18] sm:$0x3f] (!%p215_p2)  ;;  %v4890_v20 = vld [vmem:[%s6920_s2] sm:$0xff] (!%p215_p2)   ;;  %v4916_v21 = vld [vmem:[%s6920_s2 + $0x8] sm:$0xff] (!%p215_p2)  }
   0x7   : > { %v5462_v22 = vld [vmem:[%s6920_s2 + $0x10] sm:$0xff] (!%p215_p2)   ;;  %v5311_v23 = vmov (!%p215_p2), 1983009808   ;;  %v5466_v27 = vshrl.u32 (!%p215_p2), %v6925_v25, 7  ;;  %vm3085_vm2 = vcmask (!%p215_p2), 254976   ;;  %vm3158_vm3 = vcmask (!%p215_p2), 130112  }
   0x8   : > { %v1034_v24 = vunpack.c.l.s4 (!%p215_p2), %v5311_v23  ;;  %vm3223_vm4 = vcmask (!%p215_p2), 1041409   ;;  %vm3225_vm5 = vcmask (!%p215_p2), 1042434   ;;  %vm3227_vm6 = vcmask (!%p215_p2), 1043459   ;;  %p251_p4 = scmp.lt.s32.totalorder (!%p215_p2), %s5353_s22, 1 }
   0x9   : > { %vm3229_vm7 = vcmask (!%p215_p2), 1044484   ;;  %vm3231_vm8 = vcmask (!%p215_p2), 1045509   ;;  %vm3233_vm9 = vcmask (!%p215_p2), 1046534   ;;  %vm3235_vm10 = vcmask (!%p215_p2), 1047559  }
   0xa   : > { %v1035_v26 = vunpack.c.0.s8 (!%p215_p2), %v1034_v24  ;;  %vm3238_vm11 = vcmask (!%p215_p2), 80896   ;;  %vm4649_vm12 = vcmask (!%p215_p2), 7168   ;;  %vm4651_vm13 = vcmask (!%p215_p2), 15360  }
   0xb   : > { %vm4653_vm14 = vcmask (!%p215_p2), 23552   ;;  %vm4663_vm15 = vcmask (!%p215_p2), 31744  }
   0xc   : > { %v5469_v28 = vsub.s32 (!%p215_p2), %v1035_v26, %v5466_v27 }
   0xd   : > { %s6940_s23 = smov (!%p245_p3, %s4736_s23), 15  ;;  %s6942_s22 = smov (!%p251_p4, %s5353_s22), 1 }
   0xe   : > { %s4824_s26 = sshll.u32 %s6940_s23, 4  ;;  %s4739_s24 = sshll.u32 %s6942_s22, 3 }
   0xf   : > { %s5370_s29 = scalar_lea.vmem %s6918_s0, %s4824_s26  ;;  %s254_s27 = scalar_lea.vmem %s6924_s6, %s4739_s24 }
  0x10   : > { %v4826_v1 = vld [vmem:[%s5370_s29] sm:$0xff]   ;;  %v4901_v2 = vld [vmem:[%s5370_s29 + $0x8] sm:$0xff]   ;;  %v4902_v5 = vld [vmem:[%s5370_s29 + $0x10] sm:$0xff]  }
  0x11   : > { %v4904_v3 = vld [vmem:[%s5370_s29 + $0x20] sm:$0xff]   ;;  %5188 = vmatprep.subr.bf16.mxu1 %v4826_v1  ;;  %v4905_v4 = vld [vmem:[%s5370_s29 + $0x28] sm:$0xff]   ;;  %v4903_v9 = vld [vmem:[%s5370_s29 + $0x18] sm:$0xff]  }
  0x12   : > { %5204 = vmatprep.subr.bf16.mxu0 %v4904_v3  ;;  %5190 = vmatpush3.bf16.msra.mxu1 %v4826_v1  ;;  %v4908_v6 = vld [vmem:[%s5370_s29 + $0x40] sm:$0xff]   ;;  %v4909_v10 = vld [vmem:[%s5370_s29 + $0x48] sm:$0xff]   ;;  %v4906_v12 = vld [vmem:[%s5370_s29 + $0x30] sm:$0xff]  }
  0x13   : > { %5206 = vmatpush3.bf16.msra.mxu0 %v4904_v3  ;;  %5192 = vmatprep.subr.bf16.mxu1 %v4901_v2  ;;  %v4912_v13 = vld [vmem:[%s5370_s29 + $0x60] sm:$0xff]   ;;  %v4907_v14 = vld [vmem:[%s5370_s29 + $0x38] sm:$0xff]   ;;  %v4913_v15 = vld [vmem:[%s5370_s29 + $0x68] sm:$0xff]  }
  0x14   : > { %5208 = vmatprep.subr.bf16.mxu0 %v4905_v4  ;;  %v4910_v16 = vld [vmem:[%s5370_s29 + $0x50] sm:$0xff]   ;;  %v4911_v17 = vld [vmem:[%s5370_s29 + $0x58] sm:$0xff]  }
  0x15   : > { %v4914_v18 = vld [vmem:[%s5370_s29 + $0x70] sm:$0xff]   ;;  %v4915_v19 = vld [vmem:[%s5370_s29 + $0x78] sm:$0xff]  }
  0x16   : > { %5194 = vmatpush3.bf16.msra.mxu1 %v4901_v2 }
  0x17   : > { %5210 = vmatpush3.bf16.msra.mxu0 %v4905_v4  ;;  %5196 = vmatprep.subr.bf16.mxu1 %v4902_v5 }
  0x18   : > { %5220 = vmatprep.subr.bf16.mxu0 %v4908_v6 }
  0x19   : > { %5027 = vmatmul.mubr.msk.f32.vlgmr.msra.gmra.mrb[0].mxu1 %vm323_vm0, %v5381_v7 }
  0x1a   : > { %5055 = vmatmul.mubr.msk.f32.vlgmr.msra.gmra.mrb[0].mxu0 %vm323_vm0, %v5381_v7  ;;  %5198 = vmatpush3.bf16.msra.mxu1 %v4902_v5 }
  0x1b   : > { %5029 = vmatprep.mubr.msk.f32.mxu1 %vm323_vm0, %v5386_v8  ;;  %5200 = vmatprep.subr.bf16.mxu1 %v4903_v9 }
  0x1c   : > { %5222 = vmatpush3.bf16.msra.mxu0 %v4908_v6  ;;  %5057 = vmatprep.mubr.msk.f32.mxu0 %vm323_vm0, %v5386_v8 }
  0x1d   : > { %5224 = vmatprep.subr.bf16.mxu0 %v4909_v10  ;;  %5030 = vmatmul.mubr.msk.f32.gmra.mrb[2].mxu1 %vm323_vm0, %v322_v11 }
  0x1e   : > { %5058 = vmatmul.mubr.msk.f32.gmra.mrb[2].mxu0 %vm323_vm0, %v322_v11  ;;  %5202 = vmatpush3.bf16.msra.mxu1 %v4903_v9 }
  0x1f   : > { %5040 = vmatprep.mubr.msk.f32.mxu1 %vm323_vm0, %v5361_v0  ;;  %5212 = vmatprep.subr.bf16.mxu1 %v4906_v12 }
  0x20   : > { %5226 = vmatpush3.bf16.msra.mxu0 %v4909_v10  ;;  %5082 = vmatprep.mubr.msk.f32.mxu0 %vm323_vm0, %v5361_v0 }
  0x21   : > { %5236 = vmatprep.subr.bf16.mxu0 %v4912_v13  ;;  %5041 = vmatmul.mubr.msk.f32.vlgmr.msra.gmra.mrb[4].mxu1 %vm323_vm0, %v5381_v7 }
  0x22   : > { %5214 = vmatpush3.bf16.msra.mxu1 %v4906_v12  ;;  %5043 = vmatprep.mubr.msk.f32.mxu1 %vm323_vm0, %v5386_v8 }
  0x23   : > { %5216 = vmatprep.subr.bf16.mxu1 %v4907_v14  ;;  %5083 = vmatmul.mubr.msk.f32.vlgmr.msra.gmra.mrb[4].mxu0 %vm323_vm0, %v5381_v7 }
  0x24   : > { %5238 = vmatpush3.bf16.msra.mxu0 %v4912_v13  ;;  %5085 = vmatprep.mubr.msk.f32.mxu0 %vm323_vm0, %v5386_v8 }
  0x25   : > { %5044 = vmatmul.mubr.msk.f32.gmra.mrb[6].mxu1 %vm323_vm0, %v322_v11  ;;  %5240 = vmatprep.subr.bf16.mxu0 %v4913_v15 }
  0x26   : > { %5218 = vmatpush3.bf16.msra.mxu1 %v4907_v14  ;;  %5068 = vmatprep.mubr.msk.f32.mxu1 %vm323_vm0, %v5361_v0 }
  0x27   : > { %5228 = vmatprep.subr.bf16.mxu1 %v4910_v16  ;;  %5086 = vmatmul.mubr.msk.f32.gmra.mrb[6].mxu0 %vm323_vm0, %v322_v11 }
  0x28   : > { %5242 = vmatpush3.bf16.msra.mxu0 %v4913_v15  ;;  %5110 = vmatprep.mubr.msk.f32.mxu0 %vm323_vm0, %v5361_v0 }
  0x29   : > { %5069 = vmatmul.mubr.msk.f32.vlgmr.msra.gmra.mrb[8].mxu1 %vm323_vm0, %v5381_v7  ;;  %5256 = vmatprep.subr.bf16.mxu0 %v4890_v20 }
  0x2a   : > { %5230 = vmatpush3.bf16.msra.mxu1 %v4910_v16  ;;  %5071 = vmatprep.mubr.msk.f32.mxu1 %vm323_vm0, %v5386_v8 }
  0x2b   : > { %5232 = vmatprep.subr.bf16.mxu1 %v4911_v17  ;;  %5111 = vmatmul.mubr.msk.f32.vlgmr.msra.gmra.mrb[8].mxu0 %vm323_vm0, %v5381_v7 }
  0x2c   : > { %5113 = vmatprep.mubr.msk.f32.mxu0 %vm323_vm0, %v5386_v8  ;;  %5258 = vmatpush3.bf16.msra.mxu0 %v4890_v20 }
  0x2d   : > { %5072 = vmatmul.mubr.msk.f32.gmra.mrb[10].mxu1 %vm323_vm0, %v322_v11  ;;  %5260 = vmatprep.subr.bf16.mxu0 %v5462_v22 }
  0x2e   : > { %5234 = vmatpush3.bf16.msra.mxu1 %v4911_v17  ;;  %5096 = vmatprep.mubr.msk.f32.mxu1 %vm323_vm0, %v5361_v0 }
  0x2f   : > { %5244 = vmatprep.subr.bf16.mxu1 %v4914_v18  ;;  %5114 = vmatmul.mubr.msk.f32.gmra.mrb[10].mxu0 %vm323_vm0, %v322_v11 }
  0x31   : > { %5097 = vmatmul.mubr.msk.f32.vlgmr.msra.gmra.mrb[12].mxu1 %vm323_vm0, %v5381_v7 }
  0x32   : > { %5246 = vmatpush3.bf16.msra.mxu1 %v4914_v18  ;;  %5099 = vmatprep.mubr.msk.f32.mxu1 %vm323_vm0, %v5386_v8 }
  0x33   : > { %5248 = vmatprep.subr.bf16.mxu1 %v4915_v19 }
  0x35   : > { %5100 = vmatmul.mubr.msk.f32.gmra.mrb[14].mxu1 %vm323_vm0, %v322_v11 }
  0x36   : > { %5250 = vmatpush3.bf16.msra.mxu1 %v4915_v19  ;;  %5124 = vmatprep.mubr.msk.f32.mxu1 %vm323_vm0, %v5361_v0 }
  0x37   : > { %5252 = vmatprep.subr.bf16.mxu1 %v4916_v21 }
  0x39   : > { %5125 = vmatmul.mubr.msk.f32.vlgmr.msra.gmra.mrb[16].mxu1 %vm323_vm0, %v5381_v7 }
  0x3a   : > { %5127 = vmatprep.mubr.msk.f32.mxu1 %vm323_vm0, %v5386_v8  ;;  %5254 = vmatpush3.bf16.msra.mxu1 %v4916_v21 }
  0x3d   : > { %5128 = vmatmul.mubr.msk.f32.gmra.mrb[18].mxu1 %vm323_vm0, %v322_v11 }
  0xec   : > { %v5028_v29 = vpop.f32.mrb[0].mxu1 }
  0xed   : > { %v5056_v30 = vpop.f32.mrb[0].mxu0  ;;  %v5472_v31 = vrot.slane %v5028_v29, %v5469_v28  ;;  %v1236_v32 = vcombine.high %v5028_v29, %v5028_v29  ;;  %v402_v33 = vpop.f32.mrb[1].mxu1 }
  0xee   : > { %v5475_v34 = vrot.slane %v5056_v30, %v5469_v28  ;;  %v1272_v35 = vcombine.high %v5056_v30, %v5056_v30  ;;  %v572_v36 = vpop.f32.mrb[1].mxu0  ;;  %v1032_v37 = vcombine.high %v402_v33, %v402_v33  ;;  %v1039_v38 = vrot.slane %v402_v33, %v5469_v28 }
  0xef   : > { %v1080_v39 = vcombine.high %v572_v36, %v572_v36  ;;  %v1087_v40 = vrot.slane %v572_v36, %v5469_v28  ;;  %v1243_v41 = vrot.slane %v1236_v32, %v5469_v28  ;;  %v1244_v42 = vcombine.high %v5472_v31, %v5472_v31 }
  0xf0   : > { %v5483_v43 = vrot.slane %v1272_v35, %v5469_v28  ;;  %v1280_v44 = vcombine.high %v5475_v34, %v5475_v34  ;;  %v1046_v45 = vrot.slane %v1032_v37, %v5469_v28  ;;  %v1047_v46 = vcombine.high %v1039_v38, %v1039_v38  ;;  %v5031_v47 = vpop.f32.mrb[2].mxu1 }
  0xf1   : > { %v1094_v48 = vrot.slane %v1080_v39, %v5469_v28  ;;  %v1095_v49 = vcombine.high %v1087_v40, %v1087_v40  ;;  %v5489_v50 = vpop.f32.mrb[2].mxu0  ;;  %v5491_v51 = vcombine.low %v1244_v42, %v1243_v41  ;;  %v2013_v52 = vcombine.high %v5031_v47, %v5031_v47  ;;  %v412_v54 = vpop.f32.mrb[3].mxu1 }
  0xf2   : > { %v2020_v53 = vrot.slane %v5031_v47, %v5469_v28  ;;  %v1245_v55 = vcombine.high %v1243_v41, %v1243_v41  ;;  %v5494_v56 = vpop.f32.mrb[3].mxu0  ;;  %v1048_v57 = vcombine.high %v1046_v45, %v1046_v45  ;;  %v5496_v58 = vcombine.low %v1039_v38, %v1047_v46 }
  0xf3   : > { %v1252_v59 = vrot.slane %v412_v54, %v5469_v28  ;;  %v2004_v60 = vcombine.high %v412_v54, %v412_v54  ;;  %v1393_v61 = vrot.slane %v5491_v51, %v5469_v28  ;;  %v5502_v62 = vrot.slane %v2013_v52, %v5469_v28 }
  0xf4   : > { %v2028_v63 = vcombine.high %v2020_v53, %v2020_v53  ;;  %v5505_v0 = vcombine.low %v1280_v44, %v5483_v43  ;;  %v5507_v1 = vcombine.low %v1046_v45, %v1048_v57  ;;  %v1699_v2 = vrot.slane %v5496_v58, %v5469_v28  ;;  %v5042_v5 = vpop.f32.mrb[4].mxu1 }
  0xf5   : > { %v5511_v3 = vcombine.low %v1245_v55, %v1252_v59  ;;  %v2011_v4 = vrot.slane %v2004_v60, %v5469_v28  ;;  %v1079_v7 = vrot.slane %v5042_v5, %v5469_v28  ;;  %v1254_v8 = vcombine.high %v5042_v5, %v5042_v5  ;;  %v487_v10 = vpop.f32.mrb[5].mxu1 }
  0xf6   : > { %v5514_v6 = vcombine.low %v2020_v53, %v2028_v63  ;;  %v1434_v9 = vrot.slane %v5505_v0, %v5469_v28  ;;  %v1706_v11 = vrot.slane %v5507_v1, %v5469_v28  ;;  %v1056_v14 = vcombine.high %v487_v10, %v487_v10  ;;  %v5523_v15 = vpop.f32.mrb[4].mxu0 }
  0xf7   : > { %v1400_v12 = vrot.slane %v5511_v3, %v5469_v28  ;;  %v2012_v13 = vcombine.high %v2011_v4, %v2011_v4  ;;  %v1261_v17 = vrot.slane %v1254_v8, %v5469_v28  ;;  %v4774_v18 = vcombine.high %v1252_v59, %v1079_v7  ;;  %v5529_v20 = vpop.f32.mrb[5].mxu0 }
  0xf8   : > { %v1063_v19 = vrot.slane %v487_v10, %v5469_v28  ;;  %v1070_v23 = vrot.slane %v1056_v14, %v5469_v28  ;;  %v1096_v24 = vcombine.high %v1094_v48, %v1094_v48  ;;  %v5534_v26 = vcombine.low %v1087_v40, %v1095_v49  ;;  %v5045_v29 = vpop.f32.mrb[6].mxu1 }
  0xf9   : > { %v5531_v21 = vcombine.low %v2011_v4, %v2012_v13  ;;  %v1263_v30 = vcombine.high %v1261_v17, %v1261_v17  ;;  %v1410_v32 = vrot.slane %v4774_v18, %v5469_v28  ;;  %v497_v36 = vpop.f32.mrb[7].mxu1  ;;  %v2063_v46 = vcombine.high %v5489_v50, %v5489_v50 }
  0xfa   : > { %v1071_v33 = vcombine.high %v1063_v19, %v1063_v19  ;;  %v1708_v35 = vcombine.low %v5472_v31, %v1063_v19  ;;  %v1072_v38 = vcombine.high %v1070_v23, %v1070_v23  ;;  %v1740_v39 = vrot.slane %v5534_v26, %v5469_v28  ;;  %v5544_v40 = vpop.f32.mrb[6].mxu0 }
  0xfb   : > { %v5542_v41 = vcombine.low %v1094_v48, %v1096_v24  ;;  %v1403_v42 = vcombine.low %v1261_v17, %v1263_v30  ;;  %v5549_v31 = vpop.f32.mrb[7].mxu0  ;;  %v2070_v48 = vrot.slane %v5489_v50, %v5469_v28  ;;  %v1281_v52 = vcombine.high %v5483_v43, %v5483_v43 }
  0xfc   : > { %v1709_v44 = vcombine.low %v1071_v33, %v1070_v23  ;;  %v1716_v45 = vrot.slane %v1708_v35, %v5469_v28  ;;  %v5551_v47 = vcombine.low %v1072_v38, %v1079_v7  ;;  %v5070_v53 = vpop.f32.mrb[8].mxu1  ;;  %v5562_v57 = vrot.slane %v2063_v46, %v5469_v28 }
  0xfd   : > { %v1750_v49 = vrot.slane %v5542_v41, %v5469_v28  ;;  %v1417_v54 = vrot.slane %v1403_v42, %v5469_v28  ;;  %v1288_v59 = vrot.slane %v5494_v56, %v5469_v28  ;;  %v657_v60 = vpop.f32.mrb[9].mxu1  ;;  %v2078_v63 = vcombine.high %v2070_v48, %v2070_v48 }
  0xfe   : > { %v1723_v55 = vrot.slane %v1709_v44, %v5469_v28  ;;  %v2054_v3 = vcombine.high %v5494_v56, %v5494_v56  ;;  %v2038_v50 = vcombine.high %v5045_v29, %v5045_v29  ;;  %v2045_v4 = vrot.slane %v5045_v29, %v5469_v28  ;;  %v5569_v43 = vpop.f32.mrb[8].mxu0 }
  0xff   : > { %v1418_v5 = vcombine.low %v1410_v32, %v1417_v54  ;;  %v5571_v8 = vcombine.low %v1281_v52, %v1288_v59  ;;  %v1270_v10 = vrot.slane %v497_v36, %v5469_v28  ;;  %v5574_v13 = vpop.f32.mrb[9].mxu0  ;;  %v5576_v14 = vcombine.low %v2070_v48, %v2078_v63 }
 0x100   : > { %v1724_v7 = vcombine.low %v1716_v45, %v1723_v55  ;;  %v2061_v17 = vrot.slane %v2054_v3, %v5469_v28  ;;  %v2052_v18 = vrot.slane %v2038_v50, %v5469_v28  ;;  %v2053_v56 = vcombine.high %v2045_v4, %v2045_v4  ;;  %v5580_v19 = vpop.f32.mrb[10].mxu1 }
 0x101   : > { %v1444_v23 = vrot.slane %v5571_v8, %v5469_v28  ;;  %v1271_v24 = vcombine.high %v1270_v10, %v1270_v10  ;;  %v2029_v29 = vcombine.high %v497_v36, %v497_v36  ;;  %v1401_v30 = vcombine.low %v1393_v61, %v1400_v12  ;;  %v5587_v32 = vpop.f32.mrb[11].mxu1 }
 0x102   : > { %v2062_v35 = vcombine.high %v2061_v17, %v2061_v17  ;;  %v5591_v38 = vcombine.low %v2053_v56, %v2052_v18  ;;  %v1707_v42 = vcombine.low %v1699_v2, %v1706_v11  ;;  %v5599_v36 = vpop.f32.mrb[10].mxu0  ;;  %v1127_v61 = vrot.slane %v5070_v53, %v5469_v28 }
 0x103   : > { %v5601_v44 = vcombine.low %v1270_v10, %v1271_v24  ;;  %v2036_v51 = vrot.slane %v2029_v29, %v5469_v28  ;;  %5134 = vmatprep.mubr.msk.f32.mxu1 %vm1555_vm1, %v1401_v30  ;;  %v1290_v12 = vcombine.high %v5070_v53, %v5070_v53  ;;  %v5606_v45 = vpop.f32.mrb[11].mxu0  ;;  %v1104_v58 = vcombine.high %v657_v60, %v657_v60 }
 0x104   : > { %v5608_v46 = vcombine.low %v2061_v17, %v2062_v35  ;;  %5153 = vmatprep.mubr.msk.f32.mxu0 %vm1555_vm1, %v1707_v42  ;;  %v1111_v2 = vrot.slane %v657_v60, %v5469_v28  ;;  %v5614_v11 = vpop.f32.mrb[12].mxu1  ;;  %v4775_v3 = vcombine.high %v1288_v59, %v1127_v61  ;;  %5135 = vmatmul.mubr.msk.f32.vlgmr.msra.gmra.mrb[20].mxu1 %vm1555_vm1, %v1418_v5 }
 0x105   : > { %v1427_v48 = vrot.slane %v5601_v44, %v5469_v28  ;;  %v2037_v52 = vcombine.high %v2036_v51, %v2036_v51  ;;  %v2226_v53 = vcombine.low %v5502_v62, %v2036_v51  ;;  %v1297_v54 = vrot.slane %v1290_v12, %v5469_v28  ;;  %5154 = vmatmul.mubr.msk.f32.vlgmr.msra.gmra.mrb[12].mxu0 %vm1555_vm1, %v1724_v7  ;;  %v5621_v55 = vpop.f32.mrb[13].mxu1 }
 0x106   : > { %v1118_v60 = vrot.slane %v1104_v58, %v5469_v28  ;;  %v1119_v50 = vcombine.high %v1111_v2, %v1111_v2  ;;  %v1743_v62 = vcombine.low %v5475_v34, %v1111_v2  ;;  %5262 = vmatpush3.bf16.msra.mxu0 %v5462_v22  ;;  %v5631_v7 = vrot.slane %v4775_v3, %v5469_v28 }
 0x107   : > { %v2227_v10 = vcombine.low %v2037_v52, %v2045_v4  ;;  %v2234_v17 = vrot.slane %v2226_v53, %v5469_v28  ;;  %v1299_v18 = vcombine.high %v1297_v54, %v1297_v54  ;;  %v5637_v59 = vrot.slane %v5523_v15, %v5469_v28 }
 0x108   : > { %v1120_v56 = vcombine.high %v1118_v60, %v1118_v60  ;;  %v5633_v24 = vcombine.low %v1119_v50, %v1118_v60  ;;  %v5639_v29 = vpop.f32.mrb[14].mxu1  ;;  %v5645_v34 = vrot.slane %v1743_v62, %v5469_v28  ;;  %v1308_v22 = vcombine.high %v5523_v15, %v5523_v15 }
 0x109   : > { %v2241_v4 = vrot.slane %v2227_v10, %v5469_v28  ;;  %v5642_v5 = vcombine.low %v1297_v54, %v1299_v18  ;;  %v5649_v30 = vpop.f32.mrb[15].mxu1  ;;  %v1316_v51 = vcombine.high %v5637_v59, %v5637_v59  ;;  %v1128_v12 = vcombine.high %v5529_v20, %v5529_v20 }
 0x10a   : > { %v5651_v35 = vcombine.low %v1120_v56, %v1127_v61  ;;  %v1767_v42 = vrot.slane %v5633_v24, %v5469_v28  ;;  %v1315_v15 = vrot.slane %v1308_v22, %v5469_v28  ;;  %v1135_v61 = vrot.slane %v5529_v20, %v5469_v28 }
 0x10b   : > { %v5659_v58 = vcombine.low %v2234_v17, %v2241_v4  ;;  %v1461_v2 = vrot.slane %v5642_v5, %v5469_v28  ;;  %v1142_v52 = vrot.slane %v1128_v12, %v5469_v28  ;;  %v2088_v53 = vcombine.high %v5580_v19, %v5580_v19 }
 0x10c   : > { %v2095_v54 = vrot.slane %v5580_v19, %v5469_v28  ;;  %v1306_v3 = vrot.slane %v5587_v32, %v5469_v28  ;;  %v5673_v60 = vpop.f32.mrb[16].mxu1  ;;  %v5675_v50 = vcombine.low %v1316_v51, %v1315_v15  ;;  %v1143_v10 = vcombine.high %v1135_v61, %v1135_v61 }
 0x10d   : > { %v2079_v17 = vcombine.high %v5587_v32, %v5587_v32  ;;  %v2113_v20 = vcombine.high %v5544_v40, %v5544_v40  ;;  %v5681_v18 = vpop.f32.mrb[17].mxu1  ;;  %v1144_v62 = vcombine.high %v1142_v52, %v1142_v52  ;;  %v2102_v56 = vrot.slane %v2088_v53, %v5469_v28 }
 0x10e   : > { %v2103_v19 = vcombine.high %v2095_v54, %v2095_v54  ;;  %v1307_v4 = vcombine.high %v1306_v3, %v1306_v3  ;;  %v5686_v12 = vcombine.low %v1135_v61, %v1143_v10  ;;  %v2120_v32 = vrot.slane %v5544_v40, %v5469_v28 }
 0x10f   : > { %v2086_v51 = vrot.slane %v2079_v17, %v5469_v28  ;;  %v5691_v25 = vcombine.low %v1142_v52, %v1144_v62  ;;  %v5698_v53 = vrot.slane %v2113_v20, %v5469_v28  ;;  %v1733_v20 = vrot.slane %v5551_v47, %v5469_v28 }
 0x110   : > { %v5693_v33 = vcombine.low %v2103_v19, %v2102_v56  ;;  %v5695_v1 = vcombine.low %v1306_v3, %v1307_v4  ;;  %v5700_v63 = vpop.f32.mrb[18].mxu1  ;;  %v1784_v61 = vrot.slane %v5686_v12, %v5469_v28  ;;  %v2128_v37 = vcombine.high %v2120_v32, %v2120_v32 }
 0x111   : > { %v2087_v10 = vcombine.high %v2086_v51, %v2086_v51  ;;  %v2261_v17 = vcombine.low %v5562_v57, %v2086_v51  ;;  %v5705_v16 = vpop.f32.mrb[19].mxu1  ;;  %v1791_v40 = vrot.slane %v5691_v25, %v5469_v28  ;;  %v1317_v19 = vcombine.high %v1315_v15, %v1315_v15 }
 0x112   : > { %v1468_v3 = vrot.slane %v5695_v1, %v5469_v28  ;;  %v5720_v57 = vcombine.low %v2120_v32, %v2128_v37  ;;  %v1741_v4 = vcombine.low %v1733_v20, %v1740_v39  ;;  %v1324_v51 = vrot.slane %v5549_v31, %v5469_v28 }
 0x113   : > { %v5716_v62 = vrot.slane %v2261_v17, %v5469_v28  ;;  %v5718_v56 = vcombine.low %v2087_v10, %v2095_v54  ;;  %v2104_v52 = vcombine.high %v5549_v31, %v5549_v31  ;;  %v1175_v47 = vrot.slane %v5614_v11, %v5469_v28 }
 0x114   : > { %v1326_v37 = vcombine.high %v5614_v11, %v5614_v11  ;;  %v5737_v15 = vrot.slane %v5569_v43, %v5469_v28  ;;  %v1344_v26 = vcombine.high %v5569_v43, %v5569_v43  ;;  %5156 = vmatprep.mubr.msk.f32.mxu0 %vm1555_vm1, %v1741_v4  ;;  %v5742_v39 = vcombine.low %v1317_v19, %v1324_v51 }
 0x115   : > { %v2111_v31 = vrot.slane %v2104_v52, %v5469_v28  ;;  %v4776_v32 = vcombine.high %v1324_v51, %v1175_v47  ;;  %v1435_v11 = vcombine.low %v1427_v48, %v1434_v9  ;;  %v1152_v20 = vcombine.high %v5621_v55, %v5621_v55 }
 0x116   : > { %v1333_v10 = vrot.slane %v1326_v37, %v5469_v28  ;;  %v1351_v17 = vrot.slane %v1344_v26, %v5469_v28  ;;  %v1352_v43 = vcombine.high %v5737_v15, %v5737_v15  ;;  %v1159_v9 = vrot.slane %v5621_v55, %v5469_v28 }
 0x117   : > { %v2112_v19 = vcombine.high %v2111_v31, %v2111_v31  ;;  %v5760_v0 = vrot.slane %v4776_v32, %v5469_v28  ;;  %5137 = vmatprep.mubr.msk.f32.mxu1 %vm1555_vm1, %v1435_v11  ;;  %v1166_v4 = vrot.slane %v1152_v20, %v5469_v28  ;;  %v1176_v51 = vcombine.high %v5574_v13, %v5574_v13 }
 0x118   : > { %v1335_v44 = vcombine.high %v1333_v10, %v1333_v10  ;;  %v5765_v48 = vcombine.low %v1352_v43, %v1351_v17  ;;  %v1167_v26 = vcombine.high %v1159_v9, %v1159_v9  ;;  %v1793_v54 = vcombine.low %v5637_v59, %v1159_v9 }
 0x119   : > { %v5770_v37 = vcombine.low %v2111_v31, %v2112_v19  ;;  %v1183_v32 = vrot.slane %v5574_v13, %v5469_v28  ;;  %v1168_v43 = vcombine.high %v1166_v4, %v1166_v4  ;;  %v1190_v22 = vrot.slane %v1176_v51, %v5469_v28 }
 0x11a   : > { %v5775_v11 = vcombine.low %v1333_v10, %v1335_v44  ;;  %v1519_v55 = vrot.slane %v5765_v48, %v5469_v28  ;;  %v5782_v52 = vcombine.low %v1167_v26, %v1166_v4  ;;  %v5785_v31 = vrot.slane %v1793_v54, %v5469_v28 }
 0x11b   : > { %v1191_v59 = vcombine.high %v1183_v32, %v1183_v32  ;;  %v5789_v10 = vcombine.low %v1168_v43, %v1175_v47  ;;  %v1192_v19 = vcombine.high %v1190_v22, %v1190_v22  ;;  %v1452_v9 = vcombine.low %v1444_v23, %v5631_v7 }
 0x11c   : > { %v1502_v13 = vrot.slane %v5775_v11, %v5469_v28  ;;  %v1808_v44 = vrot.slane %v5782_v52, %v5469_v28  ;;  %v2163_v54 = vcombine.high %v5599_v36, %v5599_v36  ;;  %v2170_v51 = vrot.slane %v5599_v36, %v5469_v28 }
 0x11d   : > { %v5797_v4 = vcombine.low %v1183_v32, %v1191_v59  ;;  %v5803_v26 = vcombine.low %v1190_v22, %v1192_v19  ;;  %5138 = vmatmul.mubr.msk.f32.gmra.mrb[22].mxu1 %vm1555_vm1, %v1452_v9  ;;  %v1758_v8 = vcombine.low %v1750_v49, %v5645_v34  ;;  %v1353_v23 = vcombine.high %v1351_v17, %v1351_v17 }
 0x11e   : > { %v1360_v7 = vrot.slane %v5606_v45, %v5469_v28  ;;  %v5815_v52 = vrot.slane %v2163_v54, %v5469_v28  ;;  %v2178_v36 = vcombine.high %v2170_v51, %v2170_v51  ;;  %v2154_v22 = vcombine.high %v5606_v45, %v5606_v45 }
 0x11f   : > { %v1825_v47 = vrot.slane %v5797_v4, %v5469_v28  ;;  %5157 = vmatmul.mubr.msk.f32.gmra.mrb[14].mxu0 %vm1555_vm1, %v1758_v8  ;;  %v2138_v49 = vcombine.high %v5639_v29, %v5639_v29  ;;  %v2145_v34 = vrot.slane %v5639_v29, %v5469_v28  ;;  %v1342_v45 = vrot.slane %v5649_v30, %v5469_v28 }
 0x120   : > { %v5822_v41 = vcombine.low %v1353_v23, %v1360_v7  ;;  %v5828_v17 = vcombine.low %v2170_v51, %v2178_v36  ;;  %v2161_v43 = vrot.slane %v2154_v22, %v5469_v28  ;;  %v2129_v59 = vcombine.high %v5649_v30, %v5649_v30 }
 0x121   : > { %v2152_v9 = vrot.slane %v2138_v49, %v5469_v28  ;;  %v2153_v54 = vcombine.high %v2145_v34, %v2145_v34  ;;  %v1774_v8 = vrot.slane %v5651_v35, %v5469_v28  ;;  %v1343_v23 = vcombine.high %v1342_v45, %v1342_v45 }
 0x122   : > { %v1529_v19 = vrot.slane %v5822_v41, %v5469_v28  ;;  %v2162_v51 = vcombine.high %v2161_v43, %v2161_v43  ;;  %v2136_v36 = vrot.slane %v2129_v59, %v5469_v28  ;;  %v1223_v41 = vrot.slane %v5673_v60, %v5469_v28 }
 0x123   : > { %v5843_v22 = vcombine.low %v2153_v54, %v2152_v9  ;;  %v1775_v30 = vcombine.low %v1767_v42, %v1774_v8  ;;  %v1362_v49 = vcombine.high %v5673_v60, %v5673_v60  ;;  %v1504_v20 = vcombine.low %v1342_v45, %v1343_v23 }
 0x124   : > { %v5852_v35 = vcombine.low %v2161_v43, %v2162_v51  ;;  %v2137_v29 = vcombine.high %v2136_v36, %v2136_v36  ;;  %v2311_v32 = vcombine.low %v5698_v53, %v2136_v36  ;;  %v4777_v42 = vcombine.high %v1360_v7, %v1223_v41 }
 0x125   : > { %v2336_v59 = vrot.slane %v5843_v22, %v5469_v28  ;;  %5159 = vmatprep.mubr.msk.f32.mxu0 %vm1555_vm1, %v1775_v30  ;;  %v1369_v24 = vrot.slane %v1362_v49, %v5469_v28  ;;  %v1469_v60 = vcombine.low %v1461_v2, %v1468_v3  ;;  %v1512_v53 = vrot.slane %v1504_v20, %v5469_v28 }
 0x126   : > { %v2343_v43 = vrot.slane %v5852_v35, %v5469_v28  ;;  %v5868_v45 = vcombine.low %v2137_v29, %v2145_v34  ;;  %v5871_v9 = vrot.slane %v2311_v32, %v5469_v28  ;;  %v1536_v7 = vrot.slane %v4777_v42, %v5469_v28 }
 0x127   : > { %v1371_v54 = vcombine.high %v1369_v24, %v1369_v24  ;;  %5140 = vmatprep.mubr.msk.f32.mxu1 %vm1555_vm1, %v1469_v60  ;;  %v1792_v1 = vcombine.low %v1784_v61, %v1791_v40  ;;  %v1200_v5 = vcombine.high %v5681_v18, %v5681_v18  ;;  %v1207_v2 = vrot.slane %v5681_v18, %v5469_v28 }
 0x128   : > { %v6926_v3 = vrot.slane %v5742_v39, %v5469_v28  ;;  %v6927_v20 = vrot.slane %v5675_v50, %v5469_v28  ;;  %v2188_v25 = vcombine.high %v5700_v63, %v5700_v63  ;;  %v2195_v12 = vrot.slane %v5700_v63, %v5469_v28 }
 0x129   : > { %v1538_v61 = vcombine.low %v1369_v24, %v1371_v54  ;;  %5160 = vmatmul.mubr.msk.f32.gmra.mrb[16].mxu0 %vm1555_vm1, %v1792_v1  ;;  %v1214_v40 = vrot.slane %v1200_v5, %v5469_v28  ;;  %v1809_v18 = vcombine.low %v5785_v31, %v1808_v44  ;;  %v1378_v39 = vrot.slane %v5705_v16, %v5469_v28 }
 0x12a   : > { %v1486_v32 = vcombine.low %v6927_v20, %v6926_v3  ;;  %v1215_v34 = vcombine.high %v1207_v2, %v1207_v2  ;;  %v1828_v50 = vcombine.low %v5737_v15, %v1207_v2  ;;  %v2202_v8 = vrot.slane %v2188_v25, %v5469_v28 }
 0x12b   : > { %v2203_v29 = vcombine.high %v2195_v12, %v2195_v12  ;;  %v1546_v63 = vrot.slane %v1538_v61, %v5469_v28  ;;  %v1216_v51 = vcombine.high %v1214_v40, %v1214_v40  ;;  %5162 = vmatprep.mubr.msk.f32.mxu0 %vm1555_vm1, %v1809_v18  ;;  %v1379_v23 = vcombine.high %v1378_v39, %v1378_v39  ;;  %v2761_v18 = vld [vmem:[%s6922_s4] sm:$0xff] }
 0x12c   : > { %5141 = vmatmul.mubr.msk.f32.gmra.mrb[24].mxu1 %vm1555_vm1, %v1486_v32  ;;  %v2179_v31 = vcombine.high %v5705_v16, %v5705_v16  ;;  %v1842_v44 = vrot.slane %v1828_v50, %v5469_v28  ;;  %v1844_v36 = vcombine.low %v1215_v34, %v1214_v40  ;;  %v1503_v15 = vcombine.low %v5760_v0, %v1502_v13 }
 0x12d   : > { %v2363_v30 = vcombine.low %v2203_v29, %v2202_v8  ;;  %v1845_v49 = vcombine.low %v1216_v51, %v1223_v41  ;;  %v1539_v35 = vcombine.low %v1378_v39, %v1379_v23  ;;  %v1818_v42 = vrot.slane %v5789_v10, %v5469_v28  ;;  %v4812_v8 = vld [vmem:[%s6922_s4 + $0x10] sm:$0xff] }
 0x12e   : > { %v2186_v24 = vrot.slane %v2179_v31, %v5469_v28  ;;  %v1852_v60 = vrot.slane %v1844_v36, %v5469_v28  ;;  %5143 = vmatprep.mubr.msk.f32.mxu1 %vm1555_vm1, %v1503_v15  ;;  %v1520_v54 = vcombine.low %v1512_v53, %v1519_v55  ;;  %v1537_v11 = vcombine.low %v1529_v19, %v1536_v7  ;;  %v4818_v15 = vld [vmem:[%s6922_s4 + $0x30] sm:$0xff] }
 0x12f   : > { %v2377_v16 = vrot.slane %v2363_v30, %v5469_v28  ;;  %v1553_v0 = vrot.slane %v1539_v35, %v5469_v28  ;;  %v1826_v10 = vcombine.low %v1818_v42, %v1825_v47  ;;  %v6928_v1 = vrot.slane %v5803_v26, %v5469_v28  ;;  %v4815_v30 = vld [vmem:[%s6922_s4 + $0x20] sm:$0xff]  ;;  %v6025_v42 = vld.sshfl [vmem:[%s6922_s4 + $0x18] sm:$0x3 pattern:$0x76325410] }
 0x130   : > { %v2187_v13 = vcombine.high %v2186_v24, %v2186_v24  ;;  %v2346_v41 = vcombine.low %v5815_v52, %v2186_v24  ;;  %5144 = vmatmul.mubr.msk.f32.gmra.mrb[26].mxu1 %vm1555_vm1, %v1520_v54  ;;  %v1859_v2 = vrot.slane %v1845_v49, %v5469_v28  ;;  %v6929_v48 = vrot.slane %v5514_v6, %v5469_v28  ;;  %v6031_v54 = vld.sshfl [vmem:[%s6922_s4 + $0x8] sm:$0x3 pattern:$0x76325410] }
 0x131   : > { %v1843_v5 = vcombine.low %v6928_v1, %v1842_v44  ;;  %v6930_v55 = vrot.slane %v5531_v21, %v5469_v28  ;;  %v6931_v52 = vrot.slane %v5608_v46, %v5469_v28  ;;  %v6932_v4 = vrot.slane %v5591_v38, %v5469_v28  ;;  %5163 = vmatmul.mubr.msk.f32.gmra.mrb[18].mxu0 %vm1555_vm1, %v1826_v10 }
 0x132   : > { %v2360_v53 = vrot.slane %v2346_v41, %v5469_v28  ;;  %v2362_v26 = vcombine.low %v2187_v13, %v2195_v12  ;;  %5146 = vmatprep.mubr.msk.f32.mxu1 %vm1555_vm1, %v1537_v11  ;;  %v1554_v7 = vcombine.low %v1546_v63, %v1553_v0  ;;  %v1860_v6 = vcombine.low %v1852_v60, %v1859_v2  ;;  %v6002_v63 = vld [vmem:[%s6921_s3] ss:$0 sm:$0xff] }
 0x133   : > { %v2225_v19 = vcombine.low %v6930_v55, %v6929_v48  ;;  %v2259_v47 = vcombine.low %v6932_v4, %v6931_v52  ;;  %5165 = vmatprep.mubr.msk.f32.mxu0 %vm1555_vm1, %v1843_v5  ;;  %v6933_v21 = vrot.slane %v5576_v14, %v5469_v28  ;;  %v2285_v38 = vrot.slane %v5718_v56, %v5469_v28  ;;  %v6043_v5 = vld.sshfl [vmem:[%s6922_s4 + $0x28] sm:$0x3 pattern:$0x76325410] }
 0x134   : > { %v6934_v3 = vrot.slane %v5720_v57, %v5469_v28  ;;  %v6935_v20 = vrot.slane %v5770_v37, %v5469_v28  ;;  %v2326_v25 = vrot.slane %v5868_v45, %v5469_v28  ;;  %v2344_v12 = vcombine.low %v2336_v59, %v2343_v43  ;;  %5147 = vmatmul.mubr.msk.f32.gmra.mrb[28].mxu1 %vm1555_vm1, %v1554_v7 }
 0x135   : > { %v2276_v46 = vcombine.low %v6933_v21, %v5716_v62  ;;  %v6936_v14 = vrot.slane %v5828_v17, %v5469_v28  ;;  %v2370_v56 = vrot.slane %v2362_v26, %v5469_v28  ;;  %v6937_v57 = vrot.slane %v5693_v33, %v5469_v28  ;;  %5166 = vmatmul.mubr.msk.f32.gmra.mrb[20].mxu0 %vm1555_vm1, %v1860_v6  ;;  %v6071_v6 = vld.sshfl [vmem:[%s6922_s4 + $0x38] sm:$0x3 pattern:$0x76325410] }
 0x136   : > { %v2310_v32 = vcombine.low %v6935_v20, %v6934_v3  ;;  %v2327_v45 = vcombine.low %v5871_v9, %v2326_v25  ;;  %5172 = vmatprep.mubr.msk.f32.mxu0 %vm1555_vm1, %v2225_v19  ;;  %v2765_v50 = vcombine.high %v2761_v18, %v2761_v18  ;;  %v3247_v51 = vcombine.high %v4812_v8, %v4812_v8 }
 0x137   : > { %v2361_v62 = vcombine.low %v6936_v14, %v2360_v53  ;;  %v2293_v37 = vcombine.low %v2285_v38, %v6937_v57  ;;  %v2378_v61 = vcombine.low %v2370_v56, %v2377_v16  ;;  %v6005_v44 = vrot.slane %v2761_v18, %v5469_v28 }
 0x138   : > { %v6008_v36 = vrot.slane %v2765_v50, %v5469_v28  ;;  %v6017_v35 = vrot.slane %v4812_v8, %v5469_v28  ;;  %v6034_v11 = vrot.slane %v3247_v51, %v5469_v28  ;;  %v3716_v0 = vcombine.high %v4815_v30, %v4815_v30 }
 0x139   : > { %5173 = vmatmul.mubr.msk.f32.vlgmr.msra.gmra.mrb[12].mxu0 %vm1555_vm1, %v5659_v58  ;;  %v4185_v13 = vcombine.high %v4818_v15, %v4818_v15  ;;  %v6047_v2 = vcombine.high %v6005_v44, %v6005_v44  ;;  %v6058_v52 = vrot.slane %v4815_v30, %v5469_v28  ;;  %v6061_v4 = vrot.slane %v4818_v15, %v5469_v28 }
 0x13a   : > { %5175 = vmatprep.mubr.msk.f32.mxu0 %vm1555_vm1, %v2259_v47  ;;  %v6051_v48 = vcombine.high %v6008_v36, %v6008_v36  ;;  %v6055_v19 = vcombine.high %v6017_v35, %v6017_v35  ;;  %v6077_v38 = vcombine.high %v6034_v11, %v6034_v11  ;;  %v6080_v3 = vrot.slane %v3716_v0, %v5469_v28 }
 0x13b   : > { %v6083_v20 = vrot.slane %v4185_v13, %v5469_v28  ;;  %v6104_v18 = vcombine.high %v6058_v52, %v6058_v52  ;;  %v6108_v50 = vcombine.high %v6061_v4, %v6061_v4 }
 0x13d   : > { %5176 = vmatmul.mubr.msk.f32.gmra.mrb[14].mxu0 %vm1555_vm1, %v2276_v46 }
 0x13e   : > { %5178 = vmatprep.mubr.msk.f32.mxu0 %vm1555_vm1, %v2293_v37 }
 0x141   : > { %5179 = vmatmul.mubr.msk.f32.gmra.mrb[16].mxu0 %vm1555_vm1, %v2310_v32 }
 0x142   : > { %5181 = vmatprep.mubr.msk.f32.mxu0 %vm1555_vm1, %v2327_v45 }
 0x145   : > { %5182 = vmatmul.mubr.msk.f32.gmra.mrb[18].mxu0 %vm1555_vm1, %v2344_v12 }
 0x146   : > { %5184 = vmatprep.mubr.msk.f32.mxu0 %vm1555_vm1, %v2361_v62 }
 0x149   : > { %5185 = vmatmul.mubr.msk.f32.gmra.mrb[20].mxu0 %vm1555_vm1, %v2378_v61 }
 0x1d7   : > { %v5136_v33 = vpop.f32.mrb[20].mxu1 }
 0x1d8   : > { %v1642_v17 = vpop.f32.mrb[21].mxu1 }
 0x1f0   : > { %v5139_v22 = vpop.f32.mrb[22].mxu1 }
 0x1f1   : > { %v1652_v58 = vpop.f32.mrb[23].mxu1 }
 0x1ff   : > { %v5142_v59 = vpop.f32.mrb[24].mxu1 }
 0x200   : > { %v1662_v43 = vpop.f32.mrb[25].mxu1 }
 0x203   : > { %v5985_v9 = vpop.f32.mrb[26].mxu1 }
 0x204   : > { %v5987_v40 = vpop.f32.mrb[27].mxu1 }
 0x207   : > { %v5992_v39 = vpop.f32.mrb[28].mxu1 }
 0x208   : > { %v5994_v34 = vpop.f32.mrb[29].mxu1 }
 0x20c   : > { %v5174_v29 = vpop.f32.mrb[12].mxu0 }
 0x20d   : > { %v5263_v23 = vadd.f32 %v5174_v29, %v5136_v33  ;;  %v2465_v31 = vpop.f32.mrb[13].mxu0 }
 0x20e   : > { %v5264_v49 = vadd.f32 %v2465_v31, %v1642_v17  ;;  %v6118_v31 = vcombine.high %v6083_v20, %v6083_v20 }
 0x20f   : > { %v6020_v24 = vadd.f32 %v5263_v23, %v6002_v63  ;;  %v6114_v23 = vcombine.high %v6080_v3, %v6080_v3 }
 0x210   : > { %v2531_v60 = vadd.f32 %v5264_v49, %v6002_v63  ;;  %v5177_v16 = vpop.f32.mrb[14].mxu0 }
 0x211   : > { %v6038_v41 = vrot.slane %v6020_v24, %v5469_v28  ;;  %v5265_v10 = vadd.f32 %v5177_v16, %v5139_v22  ;;  %v2475_v1 = vpop.f32.mrb[15].mxu0 }
 0x212   : > { %v5266_v55 = vadd.f32 %v2475_v1, %v1652_v58  ;;  %v2551_v47 = vcombine.high %v2531_v60, %v2531_v60  ;;  %v6086_v32 = vrot.slane %v2531_v60, %v5469_v28  ;;  %v2568_v58 = vcombine.high %v6020_v24, %v6020_v24 }
 0x213   : > { %v2534_v53 = vadd.f32 %v5265_v10, %v6002_v63  ;;  %v3280_v26 = vmul.f32 %v6025_v42, %v6038_v41  ;;  %v2798_v7 = vmul.f32 %v6031_v54, %v6038_v41  ;;  %v3749_v46 = vmul.f32 %v6043_v5, %v6038_v41 }
 0x214   : > { %v5180_v21 = vpop.f32.mrb[16].mxu0  ;;  %v2533_v25 = vadd.f32 %v5266_v55, %v6002_v63  ;;  %v4218_v45 = vmul.f32 %v6071_v6, %v6038_v41  ;;  %v6094_v61 = vrot.slane %v2551_v47, %v5469_v28  ;;  %v6131_v16 = vcombine.high %v6086_v32, %v6086_v32 }
 0x215   : > { %v5267_v12 = vadd.f32 %v5180_v21, %v5142_v59  ;;  %v2485_v14 = vpop.f32.mrb[17].mxu0  ;;  %v3379_v62 = vrot.slane %v3280_v26, %v5469_v28  ;;  %v2602_v56 = vcombine.high %v2534_v53, %v2534_v53  ;;  %v2897_v37 = vrot.slane %v2798_v7, %v5469_v28 }
 0x216   : > { %v5268_v57 = vadd.f32 %v2485_v14, %v1662_v43  ;;  %v3848_v22 = vrot.slane %v3749_v46, %v5469_v28  ;;  %v2585_v15 = vcombine.high %v2533_v25, %v2533_v25  ;;  %v4317_v24 = vrot.slane %v4218_v45, %v5469_v28 }
 0x217   : > { %v2536_v33 = vadd.f32 %v5267_v12, %v6002_v63  ;;  %v3567_v17 = vsel %vm3085_vm2, %v3379_v62, 0.0  ;;  %v3086_v43 = vsel %vm3085_vm2, %v2897_v37, 0.0  ;;  %v6121_v30 = vrot.slane %v2602_v56, %v5469_v28 }
 0x218   : > { %v5183_v59 = vpop.f32.mrb[18].mxu0  ;;  %3568 = vadd.xlane.f32.xlu1 %v3567_v17  ;;  %v2535_v8 = vadd.f32 %v5268_v57, %v6002_v63  ;;  %3087 = vadd.xlane.f32.xlu0 %v3086_v43  ;;  %v4036_v60 = vsel %vm3085_vm2, %v3848_v22, 0.0  ;;  %v6135_v0 = vcombine.high %v6094_v61, %v6094_v61  ;;  %v6138_v13 = vrot.slane %v2568_v58, %v5469_v28 }
 0x219   : > { %v5269_v29 = vadd.f32 %v5183_v59, %v5985_v9  ;;  %v2495_v51 = vpop.f32.mrb[19].mxu0  ;;  %v6144_v10 = vrot.slane %v2533_v25, %v5469_v28  ;;  %v2636_v1 = vcombine.high %v2536_v33, %v2536_v33  ;;  %v2794_v21 = vmul.f32 %v6005_v44, %v6086_v32 }
 0x21a   : > { %v5270_v49 = vadd.f32 %v2495_v51, %v5987_v40  ;;  %v6141_v40 = vrot.slane %v2534_v53, %v5469_v28  ;;  %v2619_v47 = vcombine.high %v2535_v8, %v2535_v8  ;;  %v2795_v46 = vmul.f32 %v6047_v2, %v6131_v16 }
 0x21b   : > { %v6126_v9 = vadd.f32 %v5269_v29, %v6002_v63  ;;  %v6152_v12 = vrot.slane %v2585_v15, %v5469_v28  ;;  %v2796_v25 = vmul.f32 %v6008_v36, %v6094_v61  ;;  %v2797_v14 = vmul.f32 %v6051_v48, %v6135_v0 }
 0x21c   : > { %v5186_v55 = vpop.f32.mrb[20].mxu0  ;;  %4037 = vadd.xlane.f32.xlu1 %v4036_v60  ;;  %v4505_v62 = vsel %vm3085_vm2, %v4317_v24, 0.0  ;;  %v2874_v56 = vcombine.low %v2794_v21, %v2795_v46  ;;  %v2808_v57 = vmul.f32 %v6031_v54, %v6121_v30  ;;  %v6166_v37 = vrot.slane %v2536_v33, %v5469_v28 }
 0x21d   : > { %v5271_v26 = vadd.f32 %v5186_v55, %v5992_v39  ;;  %v2505_v7 = vpop.f32.mrb[21].mxu0  ;;  %v2875_v17 = vcombine.low %v2796_v25, %v2797_v14  ;;  %v6175_v22 = vrot.slane %v2636_v1, %v5469_v28  ;;  %v6178_v58 = vrot.slane %v2619_v47, %v5469_v28 }
 0x21e   : > { %v5272_v53 = vadd.f32 %v2505_v7, %v5994_v34  ;;  %v6169_v34 = vrot.slane %v2535_v8, %v5469_v28  ;;  %v6181_v59 = vadd.f32 %v5270_v49, %v6002_v63  ;;  %v2945_v33 = vrot.slane %v2808_v57, %v5469_v28 }
 0x21f   : > { %v6160_v39 = vadd.f32 %v5271_v26, %v6002_v63  ;;  %v2882_v43 = vrot.slane %v2874_v56, %v5469_v28  ;;  %v2889_v8 = vrot.slane %v2875_v17, %v5469_v28  ;;  %v3276_v29 = vmul.f32 %v6017_v35, %v6086_v32 }
 0x220   : > { %v6172_v45 = vadd.f32 %v5272_v53, %v6002_v63  ;;  %4506 = vadd.xlane.f32.xlu1 %v4505_v62  ;;  %v3277_v51 = vmul.f32 %v6055_v19, %v6131_v16  ;;  %v2670_v15 = vcombine.high %v6126_v9, %v6126_v9  ;;  %v3098_v24 = vsel %vm3085_vm2, %v2945_v33, 0.0 }
 0x221   : > { %v3278_v63 = vmul.f32 %v6034_v11, %v6094_v61  ;;  %v3279_v49 = vmul.f32 %v6077_v38, %v6135_v0  ;;  %v6199_v60 = vrot.slane %v6126_v9, %v5469_v28  ;;  %v2890_v1 = vcombine.low %v2882_v43, %v2889_v8 }
 0x222   : > { %v3356_v55 = vcombine.low %v3276_v29, %v3277_v51  ;;  %v3290_v47 = vmul.f32 %v6025_v42, %v6121_v30  ;;  %v6205_v7 = vcombine.high %v6038_v41, %v6038_v41  ;;  %v6209_v21 = vcombine.high %v6138_v13, %v6138_v13 }
 0x223   : > { %v3357_v26 = vcombine.low %v3278_v63, %v3279_v49  ;;  %v3282_v46 = vmul.f32 %v6055_v19, %v6138_v13  ;;  %v3082_v53 = vsel %vm323_vm0, %v2890_v1, 0.0  ;;  %v3284_v62 = vmul.f32 %v6077_v38, %v6144_v10 }
 0x224   : > { %3099 = vadd.xlane.f32.xlu1 %v3098_v24  ;;  %v3364_v25 = vrot.slane %v3356_v55, %v5469_v28  ;;  %v3427_v14 = vrot.slane %v3290_v47, %v5469_v28  ;;  %3083 = vadd.xlane.f32.xlu0 %v3082_v53  ;;  %v3281_v56 = vmul.f32 %v6017_v35, %v6205_v7 }
 0x225   : > { %v3371_v41 = vrot.slane %v3357_v26, %v5469_v28  ;;  %v3283_v57 = vmul.f32 %v6034_v11, %v6209_v21  ;;  %v3759_v17 = vmul.f32 %v6043_v5, %v6121_v30  ;;  %v3745_v43 = vmul.f32 %v6058_v52, %v6086_v32 }
 0x226   : > { %v3579_v33 = vsel %vm3085_vm2, %v3427_v14, 0.0  ;;  %v3746_v8 = vmul.f32 %v6104_v18, %v6131_v16  ;;  %v3747_v29 = vmul.f32 %v6080_v3, %v6094_v61  ;;  %v3380_v24 = vcombine.low %v3281_v56, %v3282_v46 }
 0x227   : > { %v3372_v51 = vcombine.low %v3364_v25, %v3371_v41  ;;  %v3381_v63 = vcombine.low %v3283_v57, %v3284_v62  ;;  %v3896_v49 = vrot.slane %v3759_v17, %v5469_v28  ;;  %v3748_v1 = vmul.f32 %v6114_v23, %v6135_v0 }
 0x228   : > { %3580 = vadd.xlane.f32.xlu1 %v3579_v33  ;;  %v3825_v55 = vcombine.low %v3745_v43, %v3746_v8  ;;  %v4228_v47 = vmul.f32 %v6071_v6, %v6121_v30  ;;  %v3750_v26 = vmul.f32 %v6058_v52, %v6205_v7  ;;  %v3388_v14 = vrot.slane %v3380_v24, %v5469_v28 }
 0x229   : > { %v3564_v53 = vsel %vm323_vm0, %v3372_v51, 0.0  ;;  %v3395_v25 = vrot.slane %v3381_v63, %v5469_v28  ;;  %v4048_v46 = vsel %vm3085_vm2, %v3896_v49, 0.0  ;;  %v3826_v62 = vcombine.low %v3747_v29, %v3748_v1 }
 0x22a   : > { %3565 = vadd.xlane.f32.xlu0 %v3564_v53  ;;  %v3833_v41 = vrot.slane %v3825_v55, %v5469_v28  ;;  %v4365_v56 = vrot.slane %v4228_v47, %v5469_v28  ;;  %v3751_v57 = vmul.f32 %v6104_v18, %v6138_v13  ;;  %v3752_v33 = vmul.f32 %v6080_v3, %v6209_v21 }
 0x22b   : > { %v3396_v17 = vcombine.low %v3388_v14, %v3395_v25  ;;  %v3753_v43 = vmul.f32 %v6114_v23, %v6144_v10  ;;  %v2600_v8 = vcombine.high %v6144_v10, %v6144_v10  ;;  %v3840_v29 = vrot.slane %v3826_v62, %v5469_v28 }
 0x22c   : > { %4049 = vadd.xlane.f32.xlu1 %v4048_v46  ;;  %v4517_v51 = vsel %vm3085_vm2, %v4365_v56, 0.0  ;;  %v3849_v24 = vcombine.low %v3750_v26, %v3751_v57  ;;  %v4214_v63 = vmul.f32 %v6061_v4, %v6086_v32  ;;  %v4215_v47 = vmul.f32 %v6108_v50, %v6131_v16 }
 0x22d   : > { %v3570_v49 = vsel %vm323_vm0, %v3396_v17, 0.0  ;;  %v3850_v1 = vcombine.low %v3752_v33, %v3753_v43  ;;  %v2803_v55 = vmul.f32 %v6031_v54, %v2600_v8  ;;  %v3841_v53 = vcombine.low %v3833_v41, %v3840_v29 }
 0x22e   : > { %3571 = vadd.xlane.f32.xlu0 %v3570_v49  ;;  %v3857_v14 = vrot.slane %v3849_v24, %v5469_v28  ;;  %v4216_v25 = vmul.f32 %v6083_v20, %v6094_v61  ;;  %v4217_v26 = vmul.f32 %v6118_v31, %v6135_v0  ;;  %v4294_v62 = vcombine.low %v4214_v63, %v4215_v47 }
 0x22f   : > { %v3864_v32 = vrot.slane %v3850_v1, %v5469_v28  ;;  %v2921_v46 = vrot.slane %v2803_v55, %v5469_v28  ;;  %v3285_v56 = vmul.f32 %v6025_v42, %v2600_v8  ;;  %v4033_v16 = vsel %vm323_vm0, %v3841_v53, 0.0 }
 0x230   : > { %4518 = vadd.xlane.f32.xlu1 %v4517_v51  ;;  %v4295_v57 = vcombine.low %v4216_v25, %v4217_v26  ;;  %v4219_v41 = vmul.f32 %v6061_v4, %v6205_v7  ;;  %v4220_v61 = vmul.f32 %v6108_v50, %v6138_v13  ;;  %v4302_v33 = vrot.slane %v4294_v62, %v5469_v28 }
 0x231   : > { %v3865_v17 = vcombine.low %v3857_v14, %v3864_v32  ;;  %v3092_v0 = vsel %vm3085_vm2, %v2921_v46, 0.0  ;;  %v3403_v43 = vrot.slane %v3285_v56, %v5469_v28  ;;  %v4221_v51 = vmul.f32 %v6083_v20, %v6209_v21 }
 0x232   : > { %4034 = vadd.xlane.f32.xlu0 %v4033_v16  ;;  %v4309_v29 = vrot.slane %v4295_v57, %v5469_v28  ;;  %v4222_v24 = vmul.f32 %v6118_v31, %v6144_v10  ;;  %v4318_v63 = vcombine.low %v4219_v41, %v4220_v61  ;;  %v6284_v49 = vrot.slane %v6181_v59, %v5469_v28 }
 0x233   : > { %v4039_v1 = vsel %vm323_vm0, %v3865_v17, 0.0  ;;  %v3754_v55 = vmul.f32 %v6043_v5, %v2600_v8  ;;  %v2601_v47 = vcombine.high %v6152_v12, %v6152_v12  ;;  %v3573_v14 = vsel %vm3085_vm2, %v3403_v43, 0.0 }
 0x234   : > { %3093 = vadd.xlane.f32.xlu1 %v3092_v0  ;;  %v4310_v53 = vcombine.low %v4302_v33, %v4309_v29  ;;  %v4319_v25 = vcombine.low %v4221_v51, %v4222_v24  ;;  %v2617_v26 = vcombine.high %v6141_v40, %v6141_v40  ;;  %v4326_v32 = vrot.slane %v4318_v63, %v5469_v28 }
 0x235   : > { %v3872_v46 = vrot.slane %v3754_v55, %v5469_v28  ;;  %v2804_v62 = vmul.f32 %v6005_v44, %v6152_v12  ;;  %v2805_v56 = vmul.f32 %v6047_v2, %v2601_v47  ;;  %v2806_v57 = vmul.f32 %v6008_v36, %v6141_v40 }
 0x236   : > { %4040 = vadd.xlane.f32.xlu0 %v4039_v1  ;;  %v4333_v16 = vrot.slane %v4319_v25, %v5469_v28  ;;  %v2807_v41 = vmul.f32 %v6051_v48, %v2617_v26  ;;  %v4223_v61 = vmul.f32 %v6071_v6, %v2600_v8  ;;  %v4502_v17 = vsel %vm323_vm0, %v4310_v53, 0.0 }
 0x237   : > { %v2922_v0 = vcombine.low %v2804_v62, %v2805_v56  ;;  %v3286_v33 = vmul.f32 %v6017_v35, %v6152_v12  ;;  %v3287_v43 = vmul.f32 %v6055_v19, %v2601_v47  ;;  %v4042_v51 = vsel %vm3085_vm2, %v3872_v46, 0.0 }
 0x238   : > { %3574 = vadd.xlane.f32.xlu1 %v3573_v14  ;;  %v4334_v29 = vcombine.low %v4326_v32, %v4333_v16  ;;  %v2923_v24 = vcombine.low %v2806_v57, %v2807_v41  ;;  %v3288_v63 = vmul.f32 %v6034_v11, %v6141_v40  ;;  %v3289_v8 = vmul.f32 %v6077_v38, %v2617_v26 }
 0x239   : > { %v2930_v1 = vrot.slane %v2922_v0, %v5469_v28  ;;  %v3404_v55 = vcombine.low %v3286_v33, %v3287_v43  ;;  %v2799_v53 = vmul.f32 %v6005_v44, %v6205_v7  ;;  %v4341_v32 = vrot.slane %v4223_v61, %v5469_v28 }
 0x23a   : > { %4503 = vadd.xlane.f32.xlu0 %v4502_v17  ;;  %v4508_v14 = vsel %vm323_vm0, %v4334_v29, 0.0  ;;  %v2937_v25 = vrot.slane %v2923_v24, %v5469_v28  ;;  %v2800_v46 = vmul.f32 %v6047_v2, %v6138_v13  ;;  %v3405_v62 = vcombine.low %v3288_v63, %v3289_v8 }
 0x23b   : > { %v3412_v56 = vrot.slane %v3404_v55, %v5469_v28  ;;  %v2801_v16 = vmul.f32 %v6008_v36, %v6209_v21  ;;  %v2802_v7 = vmul.f32 %v6051_v48, %v6144_v10  ;;  %v3755_v17 = vmul.f32 %v6058_v52, %v6152_v12 }
 0x23c   : > { %4043 = vadd.xlane.f32.xlu1 %v4042_v51  ;;  %v2938_v57 = vcombine.low %v2930_v1, %v2937_v25  ;;  %v2898_v41 = vcombine.low %v2799_v53, %v2800_v46  ;;  %v3756_v61 = vmul.f32 %v6104_v18, %v2601_v47  ;;  %v3419_v0 = vrot.slane %v3405_v62, %v5469_v28 }
 0x23d   : > { %v2899_v13 = vcombine.low %v2801_v16, %v2802_v7  ;;  %v3757_v33 = vmul.f32 %v6080_v3, %v6141_v40  ;;  %v3758_v43 = vmul.f32 %v6114_v23, %v2617_v26  ;;  %v4511_v10 = vsel %vm3085_vm2, %v4341_v32, 0.0 }
 0x23e   : > { %4509 = vadd.xlane.f32.xlu0 %v4508_v14  ;;  %v3095_v21 = vsel %vm323_vm0, %v2938_v57, 0.0  ;;  %v3873_v29 = vcombine.low %v3755_v17, %v3756_v61  ;;  %v6335_v51 = vcombine.high %v6178_v58, %v6178_v58  ;;  %v3420_v24 = vcombine.low %v3412_v56, %v3419_v0 }
 0x23f   : > { %v2906_v63 = vrot.slane %v2898_v41, %v5469_v28  ;;  %v2913_v1 = vrot.slane %v2899_v13, %v5469_v28  ;;  %v3874_v8 = vcombine.low %v3757_v33, %v3758_v43  ;;  %v4224_v14 = vmul.f32 %v6061_v4, %v6152_v12 }
 0x240   : > { %4512 = vadd.xlane.f32.xlu1 %v4511_v10  ;;  %v3881_v55 = vrot.slane %v3873_v29, %v5469_v28  ;;  %v2813_v53 = vmul.f32 %v6031_v54, %v6335_v51  ;;  %v4225_v25 = vmul.f32 %v6108_v50, %v2601_v47  ;;  %v4226_v62 = vmul.f32 %v6083_v20, %v6141_v40 }
 0x241   : > { %v2914_v32 = vcombine.low %v2906_v63, %v2913_v1  ;;  %v3888_v46 = vrot.slane %v3874_v8, %v5469_v28  ;;  %v4227_v56 = vmul.f32 %v6118_v31, %v2617_v26  ;;  %v3295_v57 = vmul.f32 %v6025_v42, %v6335_v51 }
 0x242   : > { %3096 = vadd.xlane.f32.xlu0 %v3095_v21  ;;  %v2969_v16 = vrot.slane %v2813_v53, %v5469_v28  ;;  %v4342_v7 = vcombine.low %v4224_v14, %v4225_v25  ;;  %v2618_v12 = vcombine.high %v6121_v30, %v6121_v30  ;;  %v2634_v61 = vcombine.high %v6169_v34, %v6169_v34 }
 0x243   : > { %v3089_v47 = vsel %vm323_vm0, %v2914_v32, 0.0  ;;  %v3889_v41 = vcombine.low %v3881_v55, %v3888_v46  ;;  %v4343_v17 = vcombine.low %v4226_v62, %v4227_v56  ;;  %v2653_v40 = vcombine.high %v6181_v59, %v6181_v59 }
 0x244   : > { %v3576_v26 = vsel %vm323_vm0, %v3420_v24, 0.0  ;;  %3090 = vadd.xlane.f32.xlu1 %v3089_v47  ;;  %v4350_v0 = vrot.slane %v4342_v7, %v5469_v28  ;;  %v2809_v13 = vmul.f32 %v6005_v44, %v2618_v12  ;;  %v3451_v30 = vrot.slane %v3295_v57, %v5469_v28 }
 0x245   : > { %v4357_v33 = vrot.slane %v4343_v17, %v5469_v28  ;;  %v2810_v43 = vmul.f32 %v6047_v2, %v6169_v34  ;;  %v2811_v21 = vmul.f32 %v6008_v36, %v2634_v61  ;;  %v3104_v10 = vsel %vm3085_vm2, %v2969_v16, 0.0 }
 0x246   : > { %3577 = vadd.xlane.f32.xlu0 %v3576_v26  ;;  %v2812_v59 = vmul.f32 %v6051_v48, %v6178_v58  ;;  %v2818_v29 = vmul.f32 %v6031_v54, %v6284_v49  ;;  %v3291_v24 = vmul.f32 %v6017_v35, %v2618_v12  ;;  %v3292_v8 = vmul.f32 %v6055_v19, %v6169_v34 }
 0x247   : > { %v4358_v63 = vcombine.low %v4350_v0, %v4357_v33  ;;  %v2946_v1 = vcombine.low %v2809_v13, %v2810_v43  ;;  %v3293_v55 = vmul.f32 %v6034_v11, %v2634_v61  ;;  %v6380_v53 = vrot.slane %v2670_v15, %v5469_v28 }
 0x248   : > { %3105 = vadd.xlane.f32.xlu1 %v3104_v10  ;;  %v2947_v14 = vcombine.low %v2811_v21, %v2812_v59  ;;  %v2993_v25 = vrot.slane %v2818_v29, %v5469_v28  ;;  %v3294_v32 = vmul.f32 %v6077_v38, %v6178_v58  ;;  %v4045_v46 = vsel %vm323_vm0, %v3889_v41, 0.0 }
 0x249   : > { %v3585_v62 = vsel %vm3085_vm2, %v3451_v30, 0.0  ;;  %v3428_v56 = vcombine.low %v3291_v24, %v3292_v8  ;;  %v3760_v16 = vmul.f32 %v6058_v52, %v2618_v12  ;;  %v2954_v7 = vrot.slane %v2946_v1, %v5469_v28 }
 0x24a   : > { %4046 = vadd.xlane.f32.xlu0 %v4045_v46  ;;  %v2961_v9 = vrot.slane %v2947_v14, %v5469_v28  ;;  %v3429_v15 = vcombine.low %v3293_v55, %v3294_v32  ;;  %v3300_v57 = vmul.f32 %v6025_v42, %v6284_v49  ;;  %v4514_v47 = vsel %vm323_vm0, %v4358_v63, 0.0 }
 0x24b   : > { %v3761_v17 = vmul.f32 %v6104_v18, %v6169_v34  ;;  %v3762_v41 = vmul.f32 %v6080_v3, %v2634_v61  ;;  %v3763_v26 = vmul.f32 %v6114_v23, %v6178_v58  ;;  %v3110_v13 = vsel %vm3085_vm2, %v2993_v25, 0.0 }
 0x24c   : > { %3586 = vadd.xlane.f32.xlu1 %v3585_v62  ;;  %v2962_v0 = vcombine.low %v2954_v7, %v2961_v9  ;;  %v3436_v33 = vrot.slane %v3428_v56, %v5469_v28  ;;  %v3443_v30 = vrot.slane %v3429_v15, %v5469_v28  ;;  %v4229_v10 = vmul.f32 %v6061_v4, %v2618_v12 }
 0x24d   : > { %v3897_v43 = vcombine.low %v3760_v16, %v3761_v17  ;;  %v3898_v21 = vcombine.low %v3762_v41, %v3763_v26  ;;  %v4230_v59 = vmul.f32 %v6108_v50, %v6169_v34  ;;  %v3475_v24 = vrot.slane %v3300_v57, %v5469_v28 }
 0x24e   : > { %4515 = vadd.xlane.f32.xlu0 %v4514_v47  ;;  %v3444_v29 = vcombine.low %v3436_v33, %v3443_v30  ;;  %v3764_v63 = vmul.f32 %v6043_v5, %v6335_v51  ;;  %v4231_v1 = vmul.f32 %v6083_v20, %v2634_v61  ;;  %v4232_v14 = vmul.f32 %v6118_v31, %v6178_v58 }
 0x24f   : > { %v3905_v8 = vrot.slane %v3897_v43, %v5469_v28  ;;  %v3912_v55 = vrot.slane %v3898_v21, %v5469_v28  ;;  %v4366_v12 = vcombine.low %v4229_v10, %v4230_v59  ;;  %v6413_v25 = vrot.slane %v2653_v40, %v5469_v28 }
 0x250   : > { %v2704_v34 = vcombine.high %v6160_v39, %v6160_v39  ;;  %3111 = vadd.xlane.f32.xlu1 %v3110_v13  ;;  %v3769_v32 = vmul.f32 %v6043_v5, %v6284_v49  ;;  %v2651_v61 = vcombine.high %v6166_v37, %v6166_v37  ;;  %v3101_v46 = vsel %vm323_vm0, %v2962_v0, 0.0 }
 0x251   : > { %v3913_v62 = vcombine.low %v3905_v8, %v3912_v55  ;;  %v4367_v56 = vcombine.low %v4231_v1, %v4232_v14  ;;  %v2652_v58 = vcombine.high %v6175_v22, %v6175_v22  ;;  %v3591_v40 = vsel %vm3085_vm2, %v3475_v24, 0.0 }
 0x252   : > { %3102 = vadd.xlane.f32.xlu0 %v3101_v46  ;;  %v3920_v16 = vrot.slane %v3764_v63, %v5469_v28  ;;  %v4374_v7 = vrot.slane %v4366_v12, %v5469_v28  ;;  %v2815_v9 = vmul.f32 %v6047_v2, %v2651_v61  ;;  %v3944_v57 = vrot.slane %v3769_v32, %v5469_v28 }
 0x253   : > { %v4381_v15 = vrot.slane %v4367_v56, %v5469_v28  ;;  %v2816_v47 = vmul.f32 %v6008_v36, %v6175_v22  ;;  %v2817_v17 = vmul.f32 %v6051_v48, %v2652_v58  ;;  %v2814_v41 = vmul.f32 %v6005_v44, %v6166_v37 }
 0x254   : > { %3592 = vadd.xlane.f32.xlu1 %v3591_v40  ;;  %v4233_v26 = vmul.f32 %v6071_v6, %v6335_v51  ;;  %v3296_v0 = vmul.f32 %v6017_v35, %v6166_v37  ;;  %v3297_v13 = vmul.f32 %v6055_v19, %v2651_v61  ;;  %v6442_v33 = vrot.slane %v6160_v39, %v5469_v28 }
 0x255   : > { %v3582_v30 = vsel %vm323_vm0, %v3444_v29, 0.0  ;;  %v4382_v43 = vcombine.low %v4374_v7, %v4381_v15  ;;  %v2971_v21 = vcombine.low %v2816_v47, %v2817_v17  ;;  %v2970_v10 = vcombine.low %v2814_v41, %v2815_v9 }
 0x256   : > { %3583 = vadd.xlane.f32.xlu0 %v3582_v30  ;;  %v3298_v59 = vmul.f32 %v6034_v11, %v6175_v22  ;;  %v3299_v51 = vmul.f32 %v6077_v38, %v2652_v58  ;;  %v3452_v24 = vcombine.low %v3296_v0, %v3297_v13  ;;  %v2687_v63 = vcombine.high %v6172_v45, %v6172_v45 }
 0x257   : > { %v4051_v1 = vsel %vm323_vm0, %v3913_v62, 0.0  ;;  %v4054_v8 = vsel %vm3085_vm2, %v3920_v16, 0.0  ;;  %v4238_v29 = vmul.f32 %v6071_v6, %v6284_v49  ;;  %v4060_v55 = vsel %vm3085_vm2, %v3944_v57, 0.0 }
 0x258   : > { %4055 = vadd.xlane.f32.xlu1 %v4054_v8  ;;  %v2985_v14 = vrot.slane %v2971_v21, %v5469_v28  ;;  %v4389_v12 = vrot.slane %v4233_v26, %v5469_v28  ;;  %v3453_v32 = vcombine.low %v3298_v59, %v3299_v51  ;;  %v3766_v46 = vmul.f32 %v6104_v18, %v2651_v61 }
 0x259   : > { %v3767_v56 = vmul.f32 %v6080_v3, %v6175_v22  ;;  %v3768_v62 = vmul.f32 %v6114_v23, %v2652_v58  ;;  %v6463_v40 = vcombine.high %v6199_v60, %v6199_v60  ;;  %v2978_v16 = vrot.slane %v2970_v10, %v5469_v28 }
 0x25a   : > { %4052 = vadd.xlane.f32.xlu0 %v4051_v1  ;;  %v3460_v7 = vrot.slane %v3452_v24, %v5469_v28  ;;  %v3467_v9 = vrot.slane %v3453_v32, %v5469_v28  ;;  %v3765_v15 = vmul.f32 %v6058_v52, %v6166_v37  ;;  %v4413_v57 = vrot.slane %v4238_v29, %v5469_v28 }
 0x25b   : > { %v3922_v47 = vcombine.low %v3767_v56, %v3768_v62  ;;  %v2823_v17 = vmul.f32 %v6031_v54, %v6463_v40  ;;  %v4235_v41 = vmul.f32 %v6108_v50, %v2651_v61  ;;  %v6476_v26 = vrot.slane %v6172_v45, %v5469_v28 }
 0x25c   : > { %v4520_v0 = vsel %vm323_vm0, %v4382_v43, 0.0  ;;  %4061 = vadd.xlane.f32.xlu1 %v4060_v55  ;;  %v4236_v13 = vmul.f32 %v6083_v20, %v6175_v22  ;;  %v4237_v30 = vmul.f32 %v6118_v31, %v2652_v58  ;;  %v2986_v21 = vcombine.low %v2978_v16, %v2985_v14 }
 0x25d   : > { %v3468_v10 = vcombine.low %v3460_v7, %v3467_v9  ;;  %v3921_v59 = vcombine.low %v3765_v15, %v3766_v46  ;;  %v4234_v51 = vmul.f32 %v6061_v4, %v6166_v37  ;;  %v4523_v61 = vsel %vm3085_vm2, %v4389_v12, 0.0 }
 0x25e   : > { %4521 = vadd.xlane.f32.xlu0 %v4520_v0  ;;  %v4391_v24 = vcombine.low %v4236_v13, %v4237_v30  ;;  %v2668_v1 = vcombine.high %v6284_v49, %v6284_v49  ;;  %v2669_v43 = vcombine.high %v6413_v25, %v6413_v25  ;;  %v4529_v22 = vsel %vm3085_vm2, %v4413_v57, 0.0 }
 0x25f   : > { %v3936_v58 = vrot.slane %v3922_v47, %v5469_v28  ;;  %v3017_v8 = vrot.slane %v2823_v17, %v5469_v28  ;;  %v4390_v29 = vcombine.low %v4234_v51, %v4235_v41  ;;  %v3305_v37 = vmul.f32 %v6025_v42, %v6463_v40 }
 0x260   : > { %4524 = vadd.xlane.f32.xlu1 %v4523_v61  ;;  %v2819_v55 = vmul.f32 %v6005_v44, %v2668_v1  ;;  %v2820_v14 = vmul.f32 %v6047_v2, %v6413_v25  ;;  %v2821_v49 = vmul.f32 %v6008_v36, %v2669_v43  ;;  %v3107_v12 = vsel %vm323_vm0, %v2986_v21, 0.0 }
 0x261   : > { %v3588_v32 = vsel %vm323_vm0, %v3468_v10, 0.0  ;;  %v3929_v46 = vrot.slane %v3921_v59, %v5469_v28  ;;  %v2822_v56 = vmul.f32 %v6051_v48, %v6199_v60  ;;  %v4405_v62 = vrot.slane %v4391_v24, %v5469_v28 }
 0x262   : > { %3108 = vadd.xlane.f32.xlu0 %v3107_v12  ;;  %v2994_v16 = vcombine.low %v2819_v55, %v2820_v14  ;;  %v3301_v7 = vmul.f32 %v6017_v35, %v2668_v1  ;;  %v3302_v9 = vmul.f32 %v6055_v19, %v6413_v25  ;;  %v3303_v47 = vmul.f32 %v6034_v11, %v2669_v43 }
 0x263   : > { %v3937_v15 = vcombine.low %v3929_v46, %v3936_v58  ;;  %v2995_v57 = vcombine.low %v2821_v49, %v2822_v56  ;;  %v3304_v17 = vmul.f32 %v6077_v38, %v6199_v60  ;;  %v3116_v41 = vsel %vm3085_vm2, %v3017_v8, 0.0 }
 0x264   : > { %4530 = vadd.xlane.f32.xlu1 %v4529_v22  ;;  %v4398_v0 = vrot.slane %v4390_v29, %v5469_v28  ;;  %v3499_v13 = vrot.slane %v3305_v37, %v5469_v28  ;;  %v3476_v30 = vcombine.low %v3301_v7, %v3302_v9  ;;  %v3002_v21 = vrot.slane %v2994_v16, %v5469_v28 }
 0x265   : > { %v3009_v10 = vrot.slane %v2995_v57, %v5469_v28  ;;  %v3477_v59 = vcombine.low %v3303_v47, %v3304_v17  ;;  %v3770_v51 = vmul.f32 %v6058_v52, %v2668_v1  ;;  %v3774_v24 = vmul.f32 %v6043_v5, %v6463_v40 }
 0x266   : > { %3589 = vadd.xlane.f32.xlu0 %v3588_v32  ;;  %v4406_v61 = vcombine.low %v4398_v0, %v4405_v62  ;;  %v3771_v22 = vmul.f32 %v6104_v18, %v6413_v25  ;;  %v3772_v58 = vmul.f32 %v6080_v3, %v2669_v43  ;;  %v3484_v29 = vrot.slane %v3476_v30, %v5469_v28 }
 0x267   : > { %v3010_v8 = vcombine.low %v3002_v21, %v3009_v10  ;;  %v3491_v37 = vrot.slane %v3477_v59, %v5469_v28  ;;  %v3773_v55 = vmul.f32 %v6114_v23, %v6199_v60  ;;  %v4243_v14 = vmul.f32 %v6071_v6, %v6463_v40 }
 0x268   : > { %3117 = vadd.xlane.f32.xlu1 %v3116_v41  ;;  %v3945_v49 = vcombine.low %v3770_v51, %v3771_v22  ;;  %v4239_v12 = vmul.f32 %v6061_v4, %v2668_v1  ;;  %v4240_v32 = vmul.f32 %v6108_v50, %v6413_v25  ;;  %v6534_v46 = vrot.slane %v2687_v63, %v5469_v28 }
 0x269   : > { %v4057_v56 = vsel %vm323_vm0, %v3937_v15, 0.0  ;;  %v3492_v62 = vcombine.low %v3484_v29, %v3491_v37  ;;  %v3946_v16 = vcombine.low %v3772_v58, %v3773_v55  ;;  %v3597_v7 = vsel %vm3085_vm2, %v3499_v13, 0.0 }
 0x26a   : > { %4058 = vadd.xlane.f32.xlu0 %v4057_v56  ;;  %v4241_v40 = vmul.f32 %v6083_v20, %v2669_v43  ;;  %v4242_v1 = vmul.f32 %v6118_v31, %v6199_v60  ;;  %v4414_v9 = vcombine.low %v4239_v12, %v4240_v32  ;;  %v4526_v25 = vsel %vm323_vm0, %v4406_v61, 0.0 }
 0x26b   : > { %v3968_v57 = vrot.slane %v3774_v24, %v5469_v28  ;;  %v3953_v45 = vrot.slane %v3945_v49, %v5469_v28  ;;  %v3960_v63 = vrot.slane %v3946_v16, %v5469_v28  ;;  %v4437_v15 = vrot.slane %v4243_v14, %v5469_v28 }
 0x26c   : > { %3598 = vadd.xlane.f32.xlu1 %v3597_v7  ;;  %v4415_v47 = vcombine.low %v4241_v40, %v4242_v1  ;;  %v2686_v17 = vcombine.high %v6380_v53, %v6380_v53  ;;  %v2702_v43 = vcombine.high %v6476_v26, %v6476_v26  ;;  %v2828_v41 = vmul.f32 %v6031_v54, %v6534_v46 }
 0x26d   : > { %v3961_v60 = vcombine.low %v3953_v45, %v3960_v63  ;;  %v6553_v0 = vrot.slane %v4414_v9, %v5469_v28  ;;  %v2824_v13 = vmul.f32 %v6005_v44, %v6380_v53  ;;  %v2826_v10 = vmul.f32 %v6008_v36, %v6476_v26 }
 0x26e   : > { %4527 = vadd.xlane.f32.xlu0 %v4526_v25  ;;  %v6558_v30 = vrot.slane %v4415_v47, %v5469_v28  ;;  %v2825_v21 = vmul.f32 %v6047_v2, %v2686_v17  ;;  %v2827_v59 = vmul.f32 %v6051_v48, %v2702_v43  ;;  %v4066_v51 = vsel %vm3085_vm2, %v3968_v57, 0.0 }
 0x26f   : > { %v3310_v61 = vmul.f32 %v6025_v42, %v6534_v46  ;;  %v3306_v24 = vmul.f32 %v6017_v35, %v6380_v53  ;;  %v3307_v22 = vmul.f32 %v6055_v19, %v2686_v17  ;;  %v6574_v58 = vrot.slane %v2704_v34, %v5469_v28 }
 0x270   : > { %4067 = vadd.xlane.f32.xlu1 %v4066_v51  ;;  %v4430_v29 = vcombine.low %v6553_v0, %v6558_v30  ;;  %v3018_v37 = vcombine.low %v2824_v13, %v2825_v21  ;;  %v3019_v55 = vcombine.low %v2826_v10, %v2827_v59  ;;  %v3113_v14 = vsel %vm323_vm0, %v3010_v8, 0.0 }
 0x271   : > { %v3308_v42 = vmul.f32 %v6034_v11, %v6476_v26  ;;  %v3309_v49 = vmul.f32 %v6077_v38, %v2702_v43  ;;  %v3500_v12 = vcombine.low %v3306_v24, %v3307_v22  ;;  %v4535_v32 = vsel %vm3085_vm2, %v4437_v15, 0.0 }
 0x272   : > { %3114 = vadd.xlane.f32.xlu0 %v3113_v14  ;;  %v3041_v39 = vrot.slane %v2828_v41, %v5469_v28  ;;  %v6585_v34 = vrot.slane %v3018_v37, %v5469_v28  ;;  %v6588_v56 = vrot.slane %v3019_v55, %v5469_v28  ;;  %v3594_v16 = vsel %vm323_vm0, %v3492_v62, 0.0 }
 0x273   : > { %v3523_v8 = vrot.slane %v3310_v61, %v5469_v28  ;;  %v3501_v7 = vcombine.low %v3308_v42, %v3309_v49  ;;  %v3775_v40 = vmul.f32 %v6058_v52, %v6380_v53  ;;  %v3776_v9 = vmul.f32 %v6104_v18, %v2686_v17 }
 0x274   : > { %4536 = vadd.xlane.f32.xlu1 %v4535_v32  ;;  %v3034_v1 = vcombine.low %v6585_v34, %v6588_v56  ;;  %v3777_v25 = vmul.f32 %v6080_v3, %v6476_v26  ;;  %v3778_v57 = vmul.f32 %v6114_v23, %v2702_v43  ;;  %v3779_v62 = vmul.f32 %v6043_v5, %v6534_v46 }
 0x275   : > { %v6603_v45 = vrot.slane %v3500_v12, %v5469_v28  ;;  %v6606_v63 = vrot.slane %v3501_v7, %v5469_v28  ;;  %v4248_v15 = vmul.f32 %v6071_v6, %v6534_v46  ;;  %v3969_v47 = vcombine.low %v3775_v40, %v3776_v9 }
 0x276   : > { %3595 = vadd.xlane.f32.xlu0 %v3594_v16  ;;  %v3970_v41 = vcombine.low %v3777_v25, %v3778_v57  ;;  %v4244_v0 = vmul.f32 %v6061_v4, %v6380_v53  ;;  %v4245_v13 = vmul.f32 %v6108_v50, %v2686_v17  ;;  %v3122_v30 = vsel %vm3085_vm2, %v3041_v39, 0.0 }
 0x277   : > { %v3516_v5 = vcombine.low %v6603_v45, %v6606_v63  ;;  %v4246_v21 = vmul.f32 %v6083_v20, %v6476_v26  ;;  %v4247_v10 = vmul.f32 %v6118_v31, %v2702_v43  ;;  %v4063_v6 = vsel %vm323_vm0, %v3961_v60, 0.0 }
 0x278   : > { %3123 = vadd.xlane.f32.xlu1 %v3122_v30  ;;  %v6621_v59 = vrot.slane %v3969_v47, %v5469_v28  ;;  %v6624_v53 = vrot.slane %v3970_v41, %v5469_v28  ;;  %v4438_v17 = vcombine.low %v4244_v0, %v4245_v13  ;;  %v3603_v51 = vsel %vm3085_vm2, %v3523_v8, 0.0 }
 0x279   : > { %v3992_v61 = vrot.slane %v3779_v62, %v5469_v28  ;;  %v4439_v24 = vcombine.low %v4246_v21, %v4247_v10  ;;  %v2703_v26 = vcombine.high %v6534_v46, %v6534_v46  ;;  %v4461_v43 = vrot.slane %v4248_v15, %v5469_v28 }
 0x27a   : > { %4064 = vadd.xlane.f32.xlu0 %v4063_v6  ;;  %v3985_v60 = vcombine.low %v6621_v59, %v6624_v53  ;;  %v6635_v22 = vcombine.high %v6574_v58, %v6574_v58  ;;  %v2719_v37 = vcombine.high %v6442_v33, %v6442_v33  ;;  %v6640_v55 = vrot.slane %v4438_v17, %v5469_v28 }
 0x27b   : > { %v6643_v14 = vrot.slane %v4439_v24, %v5469_v28  ;;  %v2829_v46 = vmul.f32 %v6005_v44, %v2703_v26  ;;  %v2830_v42 = vmul.f32 %v6047_v2, %v6442_v33  ;;  %v2832_v12 = vmul.f32 %v6051_v48, %v6574_v58 }
 0x27c   : > { %3604 = vadd.xlane.f32.xlu1 %v3603_v51  ;;  %v2831_v49 = vmul.f32 %v6008_v36, %v2719_v37  ;;  %v4532_v32 = vsel %vm323_vm0, %v4430_v29, 0.0  ;;  %v3311_v56 = vmul.f32 %v6017_v35, %v2703_v26  ;;  %v3312_v44 = vmul.f32 %v6055_v19, %v6442_v33  ;;  %v5302_v51 = vld.sshfl [vmem:[%s6922_s4 + $0x38] sm:$0x3 pattern:$0x76325410] }
 0x27d   : > { %v4454_v39 = vcombine.low %v6640_v55, %v6643_v14  ;;  %v3042_v34 = vcombine.low %v2829_v46, %v2830_v42  ;;  %v3313_v2 = vmul.f32 %v6034_v11, %v2719_v37  ;;  %v3314_v36 = vmul.f32 %v6077_v38, %v6574_v58  ;;  %v5300_v38 = vld.sshfl [vmem:[%s6922_s4 + $0x18] sm:$0x3 pattern:$0x76325410] }
 0x27e   : > { %4533 = vadd.xlane.f32.xlu0 %v4532_v32  ;;  %v3043_v16 = vcombine.low %v2831_v49, %v2832_v12  ;;  %v4072_v48 = vsel %vm3085_vm2, %v3992_v61, 0.0  ;;  %v4541_v29 = vsel %vm3085_vm2, %v4461_v43, 0.0  ;;  %v2833_v8 = vmul.f32 %v6031_v54, %v6635_v22 }
 0x27f   : > { %v3050_v7 = vrot.slane %v3042_v34, %v5469_v28  ;;  %v3524_v40 = vcombine.low %v3311_v56, %v3312_v44  ;;  %v3525_v9 = vcombine.low %v3313_v2, %v3314_v36  ;;  %v3780_v19 = vmul.f32 %v6058_v52, %v2703_v26 }
 0x280   : > { %4073 = vadd.xlane.f32.xlu1 %v4072_v48  ;;  %v3057_v35 = vrot.slane %v3043_v16, %v5469_v28  ;;  %v3119_v11 = vsel %vm323_vm0, %v3034_v1, 0.0  ;;  %v3315_v25 = vmul.f32 %v5300_v38, %v6635_v22  ;;  %v3781_v54 = vmul.f32 %v6104_v18, %v6442_v33 }
 0x281   : > { %v3782_v57 = vmul.f32 %v6080_v3, %v2719_v37  ;;  %v3532_v45 = vrot.slane %v3524_v40, %v5469_v28  ;;  %v3539_v63 = vrot.slane %v3525_v9, %v5469_v28  ;;  %v3783_v52 = vmul.f32 %v6114_v23, %v6574_v58 }
 0x282   : > { %3120 = vadd.xlane.f32.xlu0 %v3119_v11  ;;  %v3058_v62 = vcombine.low %v3050_v7, %v3057_v35  ;;  %v3065_v1 = vrot.slane %v2833_v8, %v5469_v28  ;;  %v3993_v15 = vcombine.low %v3780_v19, %v3781_v54  ;;  %v4249_v47 = vmul.f32 %v6061_v4, %v2703_v26 }
 0x283   : > { %v4250_v41 = vmul.f32 %v6108_v50, %v6442_v33  ;;  %v3540_v18 = vcombine.low %v3532_v45, %v3539_v63  ;;  %v3994_v3 = vcombine.low %v3782_v57, %v3783_v52  ;;  %v4251_v0 = vmul.f32 %v6083_v20, %v2719_v37  ;;  %v5301_v33 = vld.sshfl [vmem:[%s6922_s4 + $0x28] sm:$0x3 pattern:$0x76325410] }
 0x284   : > { %4542 = vadd.xlane.f32.xlu1 %v4541_v29  ;;  %v3600_v13 = vsel %vm323_vm0, %v3516_v5, 0.0  ;;  %v4001_v30 = vrot.slane %v3993_v15, %v5469_v28  ;;  %v4252_v23 = vmul.f32 %v6118_v31, %v6574_v58  ;;  %v3547_v10 = vrot.slane %v3315_v25, %v5469_v28 }
 0x285   : > { %v4462_v21 = vcombine.low %v4249_v47, %v4250_v41  ;;  %v4008_v4 = vrot.slane %v3994_v3, %v5469_v28  ;;  %v3128_v50 = vsel %vm3085_vm2, %v3065_v1, 0.0  ;;  %v3784_v20 = vmul.f32 %v5301_v33, %v6635_v22 }
 0x286   : > { %3601 = vadd.xlane.f32.xlu0 %v3600_v13  ;;  %v4463_v5 = vcombine.low %v4251_v0, %v4252_v23  ;;  %v4069_v31 = vsel %vm323_vm0, %v3985_v60, 0.0  ;;  %v3609_v53 = vsel %vm3085_vm2, %v3547_v10, 0.0  ;;  %v4253_v61 = vmul.f32 %v5302_v51, %v6635_v22 }
 0x287   : > { %v4470_v6 = vrot.slane %v4462_v21, %v5469_v28  ;;  %v4009_v59 = vcombine.low %v4001_v30, %v4008_v4  ;;  %v4016_v17 = vrot.slane %v3784_v20, %v5469_v28  ;;  %v4538_v26 = vsel %vm323_vm0, %v4454_v39, 0.0 }
 0x288   : > { %3129 = vadd.xlane.f32.xlu1 %v3128_v50  ;;  %v4477_v58 = vrot.slane %v4463_v5, %v5469_v28  ;;  %v4485_v60 = vrot.slane %v4253_v61, %v5469_v28  ;;  %v3125_v37 = vsel %vm323_vm0, %v3058_v62, 0.0  ;;  %v3606_v14 = vsel %vm323_vm0, %v3540_v18, 0.0 }
 0x289   : > { %v4078_v43 = vsel %vm3085_vm2, %v4016_v17, 0.0  ;;  %v4075_v22 = vsel %vm323_vm0, %v4009_v59, 0.0  ;;  %v6938_v49 = vlaneseq }
 0x28a   : > { %4070 = vadd.xlane.f32.xlu0 %v4069_v31  ;;  %v4478_v24 = vcombine.low %v4470_v6, %v4477_v58  ;;  %v4547_v55 = vsel %vm3085_vm2, %v4485_v60, 0.0 }
 0x28b   : > { %v3148_v12 = vand.u32 127, %v6938_v49 }
 0x28c   : > { %3610 = vadd.xlane.f32.xlu1 %v3609_v53  ;;  %v4544_v46 = vsel %vm323_vm0, %v4478_v24, 0.0 }
 0x28d   : > { %v3153_v32 = vadd.s32 4294967288, %v3148_v12  ;;  %v6717_v16 = vsub.s32 %v3148_v12, %v5466_v27 }
 0x28e   : > { %4539 = vadd.xlane.f32.xlu0 %v4538_v26 }
 0x28f   : > { %v6714_v56 = vsub.s32 %v3153_v32, %v5466_v27 }
 0x290   : > { %4079 = vadd.xlane.f32.xlu1 %v4078_v43 }
 0x292   : > { %3126 = vadd.xlane.f32.xlu0 %v3125_v37 }
 0x294   : > { %4548 = vadd.xlane.f32.xlu1 %v4547_v55 }
 0x296   : > { %3607 = vadd.xlane.f32.xlu0 %v3606_v14 }
 0x29a   : > { %4076 = vadd.xlane.f32.xlu0 %v4075_v22 }
 0x29e   : > { %4545 = vadd.xlane.f32.xlu0 %v4544_v46 }
 0x2a5   : > { %v3569_v42 = vpop.xlane.xlu1 %3568  ;;  %v3088_v34 = vpop.xlane.xlu0 %3087 }
 0x2a6   : > { %v3157_v36 = vrot.slane %v3088_v34, %v6714_v56  ;;  %v3635_v35 = vrot.slane %v3569_v42, %v6714_v56 }
 0x2a9   : > { %v4038_v28 = vpop.xlane.xlu1 %4037 }
 0x2aa   : > { %v4104_v25 = vrot.slane %v4038_v28, %v6714_v56 }
 0x2ad   : > { %v4507_v39 = vpop.xlane.xlu1 %4506 }
 0x2ae   : > { %v4573_v41 = vrot.slane %v4507_v39, %v6714_v56 }
 0x2b1   : > { %v3100_v44 = vpop.xlane.xlu1 %3099  ;;  %v3084_v2 = vpop.xlane.xlu0 %3083 }
 0x2b2   : > { %v3152_v48 = vrot.slane %v3084_v2, %v6717_v16  ;;  %v3176_v59 = vrot.slane %v3100_v44, %v6714_v56 }
 0x2b4   : > { %v3159_v8 = vsel %vm3158_vm3, %v3157_v36, %v3152_v48 }
 0x2b5   : > { %v3581_v29 = vpop.xlane.xlu1 %3580 }
 0x2b6   : > { %v3653_v26 = vrot.slane %v3581_v29, %v6714_v56 }
 0x2b7   : > { %v3566_v7 = vpop.xlane.xlu0 %3565 }
 0x2b8   : > { %v3631_v40 = vrot.slane %v3566_v7, %v6717_v16 }
 0x2b9   : > { %v4050_v9 = vpop.xlane.xlu1 %4049 }
 0x2ba   : > { %v3636_v19 = vsel %vm3158_vm3, %v3635_v35, %v3631_v40  ;;  %v4122_v49 = vrot.slane %v4050_v9, %v6714_v56 }
 0x2bb   : > { %v3572_v27 = vpop.xlane.xlu0 %3571 }
 0x2bc   : > { %v3640_v52 = vrot.slane %v3572_v27, %v6717_v16 }
 0x2bd   : > { %v4519_v11 = vpop.xlane.xlu1 %4518 }
 0x2be   : > { %v4591_v44 = vrot.slane %v4519_v11, %v6714_v56 }
 0x2bf   : > { %v4035_v38 = vpop.xlane.xlu0 %4034 }
 0x2c0   : > { %v4100_v54 = vrot.slane %v4035_v38, %v6717_v16 }
 0x2c1   : > { %v3094_v57 = vpop.xlane.xlu1 %3093 }
 0x2c2   : > { %v4105_v62 = vsel %vm3158_vm3, %v4104_v25, %v4100_v54  ;;  %v3167_v17 = vrot.slane %v3094_v57, %v6714_v56 }
 0x2c3   : > { %v4041_v45 = vpop.xlane.xlu0 %4040 }
 0x2c4   : > { %v4109_v13 = vrot.slane %v4041_v45, %v6717_v16 }
 0x2c5   : > { %v3575_v63 = vpop.xlane.xlu1 %3574 }
 0x2c6   : > { %v3644_v1 = vrot.slane %v3575_v63, %v6714_v56 }
 0x2c7   : > { %v4504_v15 = vpop.xlane.xlu0 %4503 }
 0x2c8   : > { %v3645_v47 = vsel %vm3158_vm3, %v3644_v1, %v3640_v52  ;;  %v4569_v18 = vrot.slane %v4504_v15, %v6717_v16 }
 0x2c9   : > { %v3700_v3 = vsel %vm3223_vm4, %v3645_v47, %v3636_v19  ;;  %v4044_v0 = vpop.xlane.xlu1 %4043 }
 0x2ca   : > { %v4113_v30 = vrot.slane %v4044_v0, %v6714_v56  ;;  %v4574_v23 = vsel %vm3158_vm3, %v4573_v41, %v4569_v18 }
 0x2cb   : > { %v4510_v21 = vpop.xlane.xlu0 %4509 }
 0x2cc   : > { %v4114_v10 = vsel %vm3158_vm3, %v4113_v30, %v4109_v13  ;;  %v4578_v33 = vrot.slane %v4510_v21, %v6717_v16 }
 0x2cd   : > { %v4169_v4 = vsel %vm3223_vm4, %v4114_v10, %v4105_v62  ;;  %v4513_v50 = vpop.xlane.xlu1 %4512 }
 0x2ce   : > { %v4582_v20 = vrot.slane %v4513_v50, %v6714_v56 }
 0x2cf   : > { %v3097_v5 = vpop.xlane.xlu0 %3096 }
 0x2d0   : > { %v4583_v6 = vsel %vm3158_vm3, %v4582_v20, %v4578_v33  ;;  %v3172_v31 = vrot.slane %v3097_v5, %v6717_v16 }
 0x2d1   : > { %v4638_v58 = vsel %vm3223_vm4, %v4583_v6, %v4574_v23  ;;  %v3091_v53 = vpop.xlane.xlu1 %3090 }
 0x2d2   : > { %v3177_v51 = vsel %vm3158_vm3, %v3176_v59, %v3172_v31  ;;  %v3163_v61 = vrot.slane %v3091_v53, %v6717_v16 }
 0x2d3   : > { %v3578_v24 = vpop.xlane.xlu0 %3577 }
 0x2d4   : > { %v3649_v43 = vrot.slane %v3578_v24, %v6717_v16  ;;  %v3168_v60 = vsel %vm3158_vm3, %v3167_v17, %v3163_v61 }
 0x2d5   : > { %v3224_v37 = vsel %vm3223_vm4, %v3168_v60, %v3159_v8  ;;  %v3106_v55 = vpop.xlane.xlu1 %3105 }
 0x2d6   : > { %v3654_v14 = vsel %vm3158_vm3, %v3653_v26, %v3649_v43  ;;  %v6754_v22 = vsel %vm3225_vm5, %v3177_v51, %v3224_v37  ;;  %v3185_v50 = vrot.slane %v3106_v55, %v6714_v56 }
 0x2d7   : > { %v6757_v46 = vsel %vm3225_vm5, %v3654_v14, %v3700_v3  ;;  %v4047_v42 = vpop.xlane.xlu0 %4046 }
 0x2d8   : > { %v4118_v12 = vrot.slane %v4047_v42, %v6717_v16 }
 0x2d9   : > { %v3587_v28 = vpop.xlane.xlu1 %3586 }
 0x2da   : > { %v4123_v32 = vsel %vm3158_vm3, %v4122_v49, %v4118_v12  ;;  %v3662_v33 = vrot.slane %v3587_v28, %v6714_v56 }
 0x2db   : > { %v6763_v39 = vsel %vm3225_vm5, %v4123_v32, %v4169_v4  ;;  %v4516_v34 = vpop.xlane.xlu0 %4515 }
 0x2dc   : > { %v4587_v2 = vrot.slane %v4516_v34, %v6717_v16 }
 0x2dd   : > { %v3112_v36 = vpop.xlane.xlu1 %3111 }
 0x2de   : > { %v4592_v48 = vsel %vm3158_vm3, %v4591_v44, %v4587_v2  ;;  %v3194_v61 = vrot.slane %v3112_v36, %v6714_v56 }
 0x2df   : > { %v6769_v29 = vsel %vm3225_vm5, %v4592_v48, %v4638_v58  ;;  %v3103_v8 = vpop.xlane.xlu0 %3102 }
 0x2e0   : > { %v3181_v10 = vrot.slane %v3103_v8, %v6717_v16 }
 0x2e1   : > { %v3593_v7 = vpop.xlane.xlu1 %3592 }
 0x2e2   : > { %v3186_v59 = vsel %vm3158_vm3, %v3185_v50, %v3181_v10  ;;  %v3671_v55 = vrot.slane %v3593_v7, %v6714_v56 }
 0x2e3   : > { %v3584_v35 = vpop.xlane.xlu0 %3583  ;;  %v3228_v60 = vsel %vm3227_vm6, %v3186_v59, %v6754_v22 }
 0x2e4   : > { %v3658_v4 = vrot.slane %v3584_v35, %v6717_v16 }
 0x2e5   : > { %v4056_v40 = vpop.xlane.xlu1 %4055 }
 0x2e6   : > { %v4131_v20 = vrot.slane %v4056_v40, %v6714_v56  ;;  %v3663_v31 = vsel %vm3158_vm3, %v3662_v33, %v3658_v4 }
 0x2e7   : > { %v4053_v9 = vpop.xlane.xlu0 %4052  ;;  %v3702_v37 = vsel %vm3227_vm6, %v3663_v31, %v6757_v46 }
 0x2e8   : > { %v4127_v58 = vrot.slane %v4053_v9, %v6717_v16 }
 0x2e9   : > { %v6771_v19 = vpop.xlane.xlu1 %4061 }
 0x2ea   : > { %v4132_v24 = vsel %vm3158_vm3, %v4131_v20, %v4127_v58  ;;  %v4140_v42 = vrot.slane %v6771_v19, %v6714_v56 }
 0x2eb   : > { %v6773_v27 = vpop.xlane.xlu0 %4521  ;;  %v4171_v22 = vsel %vm3227_vm6, %v4132_v24, %v6763_v39 }
 0x2ec   : > { %v4596_v2 = vrot.slane %v6773_v27, %v6717_v16 }
 0x2ed   : > { %v6775_v38 = vpop.xlane.xlu1 %4524 }
 0x2ee   : > { %v4600_v12 = vrot.slane %v6775_v38, %v6714_v56 }
 0x2ef   : > { %v3109_v11 = vpop.xlane.xlu0 %3108 }
 0x2f0   : > { %v3190_v53 = vrot.slane %v3109_v11, %v6717_v16  ;;  %v4601_v19 = vsel %vm3158_vm3, %v4600_v12, %v4596_v2 }
 0x2f1   : > { %v6777_v25 = vpop.xlane.xlu1 %4530 }
 0x2f2   : > { %v3195_v49 = vsel %vm3158_vm3, %v3194_v61, %v3190_v53  ;;  %v4609_v33 = vrot.slane %v6777_v25, %v6714_v56 }
 0x2f3   : > { %v3590_v54 = vpop.xlane.xlu0 %3589  ;;  %v3230_v35 = vsel %vm3229_vm7, %v3195_v49, %v3228_v60 }
 0x2f4   : > { %v3667_v17 = vrot.slane %v3590_v54, %v6717_v16 }
 0x2f5   : > { %v3118_v57 = vpop.xlane.xlu1 %3117 }
 0x2f6   : > { %v3203_v14 = vrot.slane %v3118_v57, %v6714_v56  ;;  %v3672_v46 = vsel %vm3158_vm3, %v3671_v55, %v3667_v17 }
 0x2f7   : > { %v6779_v62 = vpop.xlane.xlu0 %4058  ;;  %v3703_v27 = vsel %vm3229_vm7, %v3672_v46, %v3702_v37 }
 0x2f8   : > { %v4136_v36 = vrot.slane %v6779_v62, %v6717_v16 }
 0x2f9   : > { %v6781_v45 = vpop.xlane.xlu1 %3598 }
 0x2fa   : > { %v3680_v39 = vrot.slane %v6781_v45, %v6714_v56 }
 0x2fb   : > { %v6783_v63 = vpop.xlane.xlu0 %4527 }
 0x2fc   : > { %v4605_v20 = vrot.slane %v6783_v63, %v6717_v16 }
 0x2fd   : > { %v6785_v52 = vpop.xlane.xlu1 %4067 }
 0x2fe   : > { %v4149_v10 = vrot.slane %v6785_v52, %v6714_v56 }
 0x2ff   : > { %v3115_v1 = vpop.xlane.xlu0 %3114 }
 0x300   : > { %v3199_v51 = vrot.slane %v3115_v1, %v6717_v16  ;;  %v4141_v1 = vsel %vm3158_vm3, %v4140_v42, %v4136_v36  ;;  %v4640_v42 = vsel %vm3227_vm6, %v4601_v19, %v6769_v29 }
 0x301   : > { %v6787_v15 = vpop.xlane.xlu1 %4536  ;;  %v4172_v25 = vsel %vm3229_vm7, %v4141_v1, %v4171_v22 }
 0x302   : > { %v3204_v34 = vsel %vm3158_vm3, %v3203_v14, %v3199_v51  ;;  %v4618_v51 = vrot.slane %v6787_v15, %v6714_v56 }
 0x303   : > { %v3596_v47 = vpop.xlane.xlu0 %3595  ;;  %v3232_v11 = vsel %vm3231_vm8, %v3204_v34, %v3230_v35 }
 0x304   : > { %v3676_v44 = vrot.slane %v3596_v47, %v6717_v16 }
 0x305   : > { %v3124_v41 = vpop.xlane.xlu1 %3123 }
 0x306   : > { %v3212_v28 = vrot.slane %v3124_v41, %v6714_v56  ;;  %v3681_v54 = vsel %vm3158_vm3, %v3680_v39, %v3676_v44 }
 0x307   : > { %v6789_v18 = vpop.xlane.xlu0 %4064 }
 0x308   : > { %v4145_v57 = vrot.slane %v6789_v18, %v6717_v16 }
 0x309   : > { %v3605_v3 = vpop.xlane.xlu1 %3604 }
 0x30a   : > { %v3689_v38 = vrot.slane %v3605_v3, %v6714_v56  ;;  %v4150_v52 = vsel %vm3158_vm3, %v4149_v10, %v4145_v57 }
 0x30b   : > { %v6791_v0 = vpop.xlane.xlu0 %4533 }
 0x30c   : > { %v4614_v59 = vrot.slane %v6791_v0, %v6717_v16 }
 0x30d   : > { %v6793_v13 = vpop.xlane.xlu1 %4073 }
 0x30e   : > { %v4619_v55 = vsel %vm3158_vm3, %v4618_v51, %v4614_v59 }
 0x30f   : > { %v3121_v30 = vpop.xlane.xlu0 %3120 }
 0x310   : > { %v3208_v26 = vrot.slane %v3121_v30, %v6717_v16 }
 0x311   : > { %v6795_v23 = vpop.xlane.xlu1 %4542 }
 0x312   : > { %v3213_v48 = vsel %vm3158_vm3, %v3212_v28, %v3208_v26  ;;  %v4610_v26 = vsel %vm3158_vm3, %v4609_v33, %v4605_v20  ;;  %v4627_v60 = vrot.slane %v6795_v23, %v6714_v56 }
 0x313   : > { %v3602_v21 = vpop.xlane.xlu0 %3601  ;;  %v3234_v45 = vsel %vm3233_vm9, %v3213_v48, %v3232_v11  ;;  %v4641_v23 = vsel %vm3229_vm7, %v4610_v26, %v4640_v42 }
 0x314   : > { %v3685_v8 = vrot.slane %v3602_v21, %v6717_v16  ;;  %v4642_v34 = vsel %vm3231_vm8, %v4619_v55, %v4641_v23 }
 0x315   : > { %v3130_v6 = vpop.xlane.xlu1 %3129 }
 0x316   : > { %v3221_v40 = vrot.slane %v3130_v6, %v6714_v56  ;;  %v3690_v47 = vsel %vm3158_vm3, %v3689_v38, %v3685_v8  ;;  %v3704_v6 = vsel %vm3231_vm8, %v3681_v54, %v3703_v27 }
 0x317   : > { %v6802_v5 = vpop.xlane.xlu0 %4070  ;;  %v3705_v58 = vsel %vm3233_vm9, %v3690_v47, %v3704_v6 }
 0x318   : > { %v4154_v41 = vrot.slane %v6802_v5, %v6717_v16  ;;  %v4158_v5 = vrot.slane %v6793_v13, %v6714_v56 }
 0x319   : > { %v3611_v32 = vpop.xlane.xlu1 %3610 }
 0x31a   : > { %v3698_v18 = vrot.slane %v3611_v32, %v6714_v56  ;;  %v4159_v53 = vsel %vm3158_vm3, %v4158_v5, %v4154_v41 }
 0x31b   : > { %v6813_v43 = vpop.xlane.xlu0 %4539 }
 0x31c   : > { %v4623_v63 = vrot.slane %v6813_v43, %v6717_v16  ;;  %v4173_v43 = vsel %vm3231_vm8, %v4150_v52, %v4172_v25 }
 0x31d   : > { %v4080_v30 = vpop.xlane.xlu1 %4079  ;;  %v4174_v15 = vsel %vm3233_vm9, %v4159_v53, %v4173_v43 }
 0x31e   : > { %v4167_v61 = vrot.slane %v4080_v30, %v6714_v56  ;;  %v4628_v49 = vsel %vm3158_vm3, %v4627_v60, %v4623_v63 }
 0x31f   : > { %v3127_v7 = vpop.xlane.xlu0 %3126  ;;  %v4643_v29 = vsel %vm3233_vm9, %v4628_v49, %v4642_v34 }
 0x320   : > { %v3217_v9 = vrot.slane %v3127_v7, %v6717_v16  ;;  %v4821_v7 = vld [vmem:[%s6923_s5] ss:$0 sm:$0xff] }
 0x321   : > { %v4549_v37 = vpop.xlane.xlu1 %4548 }
 0x322   : > { %v3222_v62 = vsel %vm3158_vm3, %v3221_v40, %v3217_v9  ;;  %v4636_v32 = vrot.slane %v4549_v37, %v6714_v56 }
 0x323   : > { %v3608_v3 = vpop.xlane.xlu0 %3607  ;;  %v3236_v21 = vsel %vm3235_vm10, %v3222_v62, %v3234_v45 }
 0x324   : > { %v3694_v4 = vrot.slane %v3608_v3, %v6717_v16  ;;  %v3239_v50 = vsel %vm3238_vm11, %v3236_v21, 0.0 }
 0x325   : > { %3240 = vadd.xlane.f32.xlu0 %v3239_v50 }
 0x326   : > { %v3699_v31 = vsel %vm3158_vm3, %v3698_v18, %v3694_v4 }
 0x327   : > { %v4077_v13 = vpop.xlane.xlu0 %4076  ;;  %v3706_v17 = vsel %vm3235_vm10, %v3699_v31, %v3705_v58 }
 0x328   : > { %v4163_v0 = vrot.slane %v4077_v13, %v6717_v16  ;;  %v3708_v24 = vsel %vm3238_vm11, %v3706_v17, 0.0 }
 0x329   : > { %3709 = vadd.xlane.f32.xlu1 %v3708_v24 }
 0x32a   : > { %v4168_v14 = vsel %vm3158_vm3, %v4167_v61, %v4163_v0 }
 0x32b   : > { %v4546_v12 = vpop.xlane.xlu0 %4545  ;;  %v4175_v28 = vsel %vm3235_vm10, %v4168_v14, %v4174_v15 }
 0x32c   : > { %v4632_v22 = vrot.slane %v4546_v12, %v6717_v16  ;;  %v4177_v46 = vsel %vm3238_vm11, %v4175_v28, 0.0 }
 0x32d   : > { %4178 = vadd.xlane.f32.xlu0 %v4177_v46 }
 0x32e   : > { %v4637_v44 = vsel %vm3158_vm3, %v4636_v32, %v4632_v22 }
 0x32f   : > { %v4644_v2 = vsel %vm3235_vm10, %v4637_v44, %v4643_v29 }
 0x330   : > { %v4646_v36 = vsel %vm3238_vm11, %v4644_v2, 0.0 }
 0x331   : > { %4647 = vadd.xlane.f32.xlu1 %v4646_v36 }
 0x3b2   : > { %v3241_v48 = vpop.xlane.xlu0 %3240 }
 0x3b6   : > { %v3710_v8 = vpop.xlane.xlu1 %3709 }
 0x3b7   : > { %v4650_v16 = vsel %vm4649_vm12, %v3241_v48, %v3710_v8 }
 0x3ba   : > { %v4179_v56 = vpop.xlane.xlu0 %4178 }
 0x3bb   : > { %v4652_v35 = vsel %vm4651_vm13, %v4650_v16, %v4179_v56 }
 0x3be   : > { %v4648_v39 = vpop.xlane.xlu1 %4647 }
 0x3bf   : > { %v4654_v40 = vsel %vm4653_vm14, %v4652_v35, %v4648_v39 }
 0x3c0   : > { %v4662_v9 = vadd.f32 %v4821_v7, %v4654_v40 }
 0x3c2   : > { %v4664_v19 = vsel %vm4663_vm15, %v4662_v9, -inf }
 0x3c3   : > { %4665 = vmax.xlane.f32.xlu0 %v4664_v19 }
 0x450   : > { %v4666_v27 = vpop.xlane.xlu0 %4665 }
 0x451   : > { %v4667_v38 = vsub.f32 %v4662_v9, %v4666_v27 }
 0x453   : > { %v4668_v11 = vmul.f32 1.442695, %v4667_v38 }
 0x455   : > { %5296 = vpow2.f32 %v4668_v11 }
 0x45f   : > { %v5297_v54 = vpop.eup %5296 }
 0x460   : > { %v4670_v57 = vsel %vm4663_vm15, %v5297_v54, 0.0 }
 0x461   : > { %4671 = vadd.xlane.f32.xlu1 %v4670_v57 }
 0x4ee   : > { %v4672_v62 = vpop.xlane.xlu1 %4671 }
 0x4ef   : > { %5298 = vlog2.f32 %v4672_v62 }
 0x4f9   : > { %v5299_v45 = vpop.eup %5298 }
 0x4fa   : > { %v4674_v1 = vmul.f32 0.6931472, %v5299_v45 }
 0x4fc   : > { %v4675_v47 = vadd.f32 %v4674_v1, %v4666_v27 }
 0x4fe   : > { %v4676_v41 = vsub.f32 %v4662_v9, %v4675_v47 }
 0x500   : > { %4677 = vst.msk [vmem:[%s254_s27] sm:$0xff] %vm4663_vm15, %v4676_v41 }
 0x501 PF: > { %s16_s21 = sadd.s32 1, %s5309_s21  }
 0x502   : > { %p13_p5 = scmp.ge.s32.totalorder %s16_s21, 4  }
 0x504   :  { %15 = sbr.rel (!%p13_p5) target bundleno = 1 (0x1), region = 79 }

</bundles_post_ra>
